<compile_context>
chip_gen: v7x
topology: tpu7x:2x2x1
jax: 0.10.0
libtpu: 0.0.40
codegen_flags: <defaults>
</compile_context>

<pallas_src>
import functools
import numpy as np
import jax
import jax.numpy as jnp
from jax.experimental import pallas as pl
from jax.experimental.pallas import tpu as pltpu

_VMEM_LIMIT = 32 * 1024 * 1024


# ----------------------------------------------------------------------------
# Fused bidirectional GRU recurrence.  One grid step == TC timesteps.
#   h scratch: (B, 2H)  = [h_fwd | h_bwd] on the lane axis
#   gi_*      : (T_pad, B, 2H) precomputed input projections per gate
#               (forward half at time s, backward half at time T_pad-1-s)
#   wh_*      : (2H, 2H) block-diagonal [Whh_f^T, 0; 0, Whh_b^T] per gate
# ----------------------------------------------------------------------------
def _bigru_chunk_kernel(lens_ref, gir_ref, giz_ref, gin_ref,
                        whr_ref, whz_ref, whn_ref, bhn_ref,
                        *refs, seq_out, TC, T_pad, H):
    if seq_out:
        outf_ref, outb_ref, hlast_ref, h_ref = refs
    else:
        hlast_ref, h_ref = refs

    c = pl.program_id(0)

    @pl.when(c == 0)
    def _():
        h_ref[...] = jnp.zeros_like(h_ref)

    lens = lens_ref[...]                      # (B, 1) int32
    whr = whr_ref[...]
    whz = whz_ref[...]
    whn = whn_ref[...]
    bhn = bhn_ref[...]                        # (1, 2H)

    B = h_ref.shape[0]
    lane = jax.lax.broadcasted_iota(jnp.int32, (B, 2 * H), 1)
    is_fwd = lane < H

    h = h_ref[...]                            # (B, 2H)
    # Unrolled inner loop over the time chunk (static python loop).
    for j in range(TC):
        s = c * TC + j
        gh_r = jnp.dot(h, whr, preferred_element_type=jnp.float32)
        gh_z = jnp.dot(h, whz, preferred_element_type=jnp.float32)
        gh_n = jnp.dot(h, whn, preferred_element_type=jnp.float32) + bhn
        r = jax.nn.sigmoid(gir_ref[j] + gh_r)
        z = jax.nn.sigmoid(giz_ref[j] + gh_z)
        n = jnp.tanh(gin_ref[j] + r * gh_n)
        h_new = (1.0 - z) * n + z * h
        # packed-sequence mask rebuilt in-kernel (no per-step mask DMA):
        # forward lanes process time s, backward lanes process time T_pad-1-s.
        t_eff = jnp.where(is_fwd, s, T_pad - 1 - s)
        m = (t_eff < lens).astype(jnp.float32)          # (B, 2H)
        h = m * h_new + (1.0 - m) * h                   # freeze past length
        if seq_out:
            hm = h * m                                  # pad_packed pads with 0
            # NOTE: lane slice at offset H; free when H is a multiple of 128.
            outf_ref[j] = hm[:, :H]
            outb_ref[TC - 1 - j] = hm[:, H:]
    h_ref[...] = h

    @pl.when(c == pl.num_programs(0) - 1)
    def _():
        hlast_ref[...] = h                              # final packed states


def _bigru_layer(gi_r, gi_z, gi_n, lens_b1, lp, *, B, H, TC, T_pad, seq_out):
    nch = T_pad // TC
    kernel = functools.partial(_bigru_chunk_kernel, seq_out=seq_out,
                               TC=TC, T_pad=T_pad, H=H)
    gi_spec = pl.BlockSpec((TC, B, 2 * H), lambda c: (c, 0, 0))
    const = lambda shape: pl.BlockSpec(shape, lambda c: (0,) * len(shape))
    in_specs = [
        const((B, 1)),                 # lengths (resident, single DMA)
        gi_spec, gi_spec, gi_spec,     # gi_r, gi_z, gi_n chunks
        const((2 * H, 2 * H)),         # wh_r (resident)
        const((2 * H, 2 * H)),         # wh_z
        const((2 * H, 2 * H)),         # wh_n
        const((1, 2 * H)),             # b_hn
    ]
    if seq_out:
        out_shape = (jax.ShapeDtypeStruct((T_pad, B, H), jnp.float32),
                     jax.ShapeDtypeStruct((T_pad, B, H), jnp.float32),
                     jax.ShapeDtypeStruct((B, 2 * H), jnp.float32))
        out_specs = (
            pl.BlockSpec((TC, B, H), lambda c: (c, 0, 0)),
            pl.BlockSpec((TC, B, H), lambda c: (nch - 1 - c, 0, 0)),
            pl.BlockSpec((B, 2 * H), lambda c: (0, 0)),
        )
    else:
        out_shape = jax.ShapeDtypeStruct((B, 2 * H), jnp.float32)
        out_specs = pl.BlockSpec((B, 2 * H), lambda c: (0, 0))

    return pl.pallas_call(
        kernel,
        out_shape=out_shape,
        grid_spec=pltpu.PrefetchScalarGridSpec(
            num_scalar_prefetch=0,
            grid=(nch,),
            in_specs=in_specs,
            out_specs=out_specs,
            scratch_shapes=[pltpu.VMEM((B, 2 * H), jnp.float32)]),
        compiler_params=pltpu.CompilerParams(
            dimension_semantics=("arbitrary",),
            vmem_limit_bytes=_VMEM_LIMIT),
    )(lens_b1, gi_r, gi_z, gi_n, lp["wh_r"], lp["wh_z"], lp["wh_n"], lp["bhn"])


def _time_chunk(T, time_chunk):
    TC = max(1, min(time_chunk, T))
    T_pad = ((T + TC - 1) // TC) * TC
    return TC, T_pad


def bidirectional_gru(x_btf, lengths, layers, *, time_chunk=8, need_seq=True):
    """Multi-layer bidirectional GRU with packed-sequence semantics (masking).

    Returns (out_f, out_b, finals): time-major (T_pad, B, H) per-direction
    outputs of the last layer (or None, None when need_seq=False) and a list of
    (B, 2H) final states ([fwd | bwd]) per layer.
    """
    B, T, _ = x_btf.shape
    TC, T_pad = _time_chunk(T, time_chunk)
    lens_b1 = jnp.asarray(lengths, jnp.int32).reshape(B, 1)
    x_pad = x_btf if T_pad == T else jnp.pad(
        x_btf, ((0, 0), (0, T_pad - T), (0, 0)))

    num_layers = len(layers)
    out_f = out_b = None
    finals = []
    for li, lp in enumerate(layers):
        H = lp["H"]
        # Hoisted input projections (one big matmul per gate/direction), emitted
        # directly in time-major; backward direction reads time-reversed input.
        if li == 0:
            xf, xb = x_pad, x_pad[:, ::-1, :]

            def proj(wf, wb):
                return jnp.concatenate(
                    [jnp.einsum("bti,ih->tbh", xf, wf),
                     jnp.einsum("bti,ih->tbh", xb, wb)], axis=-1)
        else:
            of, ob = out_f, out_b
            ofr, obr = of[::-1], ob[::-1]
            Hp = of.shape[-1]

            def proj(wf, wb):
                fwd = (jnp.einsum("tbh,hk->tbk", of, wf[:Hp])
                       + jnp.einsum("tbh,hk->tbk", ob, wf[Hp:]))
                bwd = (jnp.einsum("tbh,hk->tbk", ofr, wb[:Hp])
                       + jnp.einsum("tbh,hk->tbk", obr, wb[Hp:]))
                return jnp.concatenate([fwd, bwd], axis=-1)

        gi_r = proj(lp["wi_r_f"], lp["wi_r_b"]) + lp["b_r"]
        gi_z = proj(lp["wi_z_f"], lp["wi_z_b"]) + lp["b_z"]
        gi_n = proj(lp["wi_n_f"], lp["wi_n_b"]) + lp["b_n"]

        seq_out = need_seq or (li < num_layers - 1)
        res = _bigru_layer(gi_r, gi_z, gi_n, lens_b1, lp,
                           B=B, H=H, TC=TC, T_pad=T_pad, seq_out=seq_out)
        if seq_out:
            out_f, out_b, h_last = res
        else:
            out_f = out_b = None
            h_last = res
        finals.append(h_last)
        # TODO(synk): inter-layer dropout (args.encoder_dropout) omitted.
    return out_f, out_b, finals


# ----------------------------------------------------------------------------
# user-conditioned gate: sigmoid(gate_proj([enc, user])) * enc   (row-tiled)
# ----------------------------------------------------------------------------
def _gate_kernel(ef_ref, eb_ref, ugf_ref, ugb_ref,
                 wff_ref, wbf_ref, wfb_ref, wbb_ref,
                 outf_ref, outb_ref):
    ef = ef_ref[...]
    eb = eb_ref[...]
    gf = jax.nn.sigmoid(
        jnp.dot(ef, wff_ref[...], preferred_element_type=jnp.float32)
        + jnp.dot(eb, wbf_ref[...], preferred_element_type=jnp.float32)
        + ugf_ref[...])
    gb = jax.nn.sigmoid(
        jnp.dot(ef, wfb_ref[...], preferred_element_type=jnp.float32)
        + jnp.dot(eb, wbb_ref[...], preferred_element_type=jnp.float32)
        + ugb_ref[...])
    outf_ref[...] = ef * gf
    outb_ref[...] = eb * gb


def gated_hidden(ef2, eb2, ugf, ugb, wff, wbf, wfb, wbb, *, RT):
    N, H = ef2.shape
    row_spec = pl.BlockSpec((RT, H), lambda i: (i, 0))
    const = lambda shape: pl.BlockSpec(shape, lambda i: (0, 0))
    return pl.pallas_call(
        _gate_kernel,
        out_shape=(jax.ShapeDtypeStruct((N, H), jnp.float32),
                   jax.ShapeDtypeStruct((N, H), jnp.float32)),
        grid_spec=pltpu.PrefetchScalarGridSpec(
            num_scalar_prefetch=0,
            grid=(N // RT,),
            in_specs=[row_spec, row_spec,
                      const((RT, H)), const((RT, H)),
                      const((H, H)), const((H, H)),
                      const((H, H)), const((H, H))],
            out_specs=(row_spec, row_spec)),
        compiler_params=pltpu.CompilerParams(
            dimension_semantics=("parallel",),
            vmem_limit_bytes=_VMEM_LIMIT),
    )(ef2, eb2, ugf, ugb, wff, wbf, wfb, wbb)


# ----------------------------------------------------------------------------
# small dense layer (single block; operands are (B, *) sized)
# ----------------------------------------------------------------------------
def _linear_kernel(x_ref, w_ref, b_ref, out_ref):
    out_ref[...] = (jnp.dot(x_ref[...], w_ref[...],
                            preferred_element_type=jnp.float32) + b_ref[...])


def linear(x, wt, b):
    return pl.pallas_call(
        _linear_kernel,
        out_shape=jax.ShapeDtypeStruct((x.shape[0], wt.shape[1]), jnp.float32),
    )(x, wt, b)


# ----------------------------------------------------------------------------
# Encoder.forward
# ----------------------------------------------------------------------------
def encoder_forward(params, src_embed, src_lengths, u_review, u_review_lens,
                    user_embed, *, batch_size, mem_size, time_chunk=8):
    H = params["H"]
    B, S, _ = src_embed.shape
    T_out = int(np.max(np.asarray(src_lengths)))

    # 1) bidirectional GRU over source (packed semantics -> mask / zero pad).
    out_f, out_b, _ = bidirectional_gru(
        src_embed, src_lengths, params["gru"],
        time_chunk=time_chunk, need_seq=True)
    T_pad = out_f.shape[0]

    # 2) same GRU over user reviews: only the last layer's final states matter.
    _, _, rev_finals = bidirectional_gru(
        u_review, u_review_lens, params["gru"],
        time_chunk=time_chunk, need_seq=False)
    u_review_final = rev_finals[-1].reshape(batch_size, mem_size, -1)
    del u_review_final   # computed (as in the PyTorch forward) but not returned

    # 3) user-conditioned gate.  user projection computed ONCE (B, 2H).
    ug = linear(user_embed, params["gate_w2t"], params["gate_b"])       # (B,2H)
    TC, _ = _time_chunk(S, time_chunk)
    N = T_pad * B
    RT = B * TC
    if RT % 8 != 0 and RT != N:
        RT = N
    ug_tile = jnp.tile(ug, (RT // B, 1))                                # (RT,2H)
    gated_f, gated_b = gated_hidden(
        out_f.reshape(N, H), out_b.reshape(N, H),
        ug_tile[:, :H], ug_tile[:, H:],
        params["gate_wff"], params["gate_wbf"],
        params["gate_wfb"], params["gate_wbb"], RT=RT)

    gated = jnp.concatenate(
        [gated_f.reshape(T_pad, B, H), gated_b.reshape(T_pad, B, H)], axis=-1)
    encoder_hidden = jnp.transpose(gated[:T_out], (1, 0, 2))   # (B, T_out, 2H)

    # 4) input_proj on the last time position
    encoder_final = linear(encoder_hidden[:, -1, :],
                           params["proj_wt"], params["proj_b"])         # (B, H)
    hidden = encoder_final[None, :, :]
    context_hidden = encoder_final[:, None, :]
    return hidden, encoder_hidden, context_hidden


# ----------------------------------------------------------------------------
# parameter init (raw PyTorch-style layout) + packing into kernel layout
# ----------------------------------------------------------------------------
def init_params(key, embed_dim, hidden_size, num_layers):
    H = hidden_size
    keys = iter(jax.random.split(key, 8 * num_layers + 4))

    def u(shape, scale):
        return jax.random.uniform(next(keys), shape, jnp.float32, -scale, scale)

    k_gru = 1.0 / np.sqrt(H)
    gru_layers = []
    in_size = embed_dim
    for _ in range(num_layers):
        dirs = []
        for _d in range(2):                       # forward, backward
            wi = u((3 * H, in_size), k_gru)       # weight_ih (r|z|n)
            wh = u((3 * H, H), k_gru)             # weight_hh
            bi = u((3 * H,), k_gru)
            bh = u((3 * H,), k_gru)
            dirs.append((wi.T, wh.T, bi.reshape(1, -1), bh.reshape(1, -1)))
        gru_layers.append(tuple(dirs))
        in_size = 2 * H

    k_gate = 1.0 / np.sqrt(2 * H + embed_dim)
    gw = u((2 * H, 2 * H + embed_dim), k_gate)    # gate_proj weight
    gb = u((2 * H,), k_gate)
    k_proj = 1.0 / np.sqrt(2 * H)
    pw = u((H, 2 * H), k_proj)                    # input_proj weight
    pb = u((H,), k_proj)
    # NOTE: init_hidden and dropout_layer exist in __init__ but unused here.
    return {
        "gru": gru_layers,
        "gate_w1t": gw[:, :2 * H].T, "gate_w2t": gw[:, 2 * H:].T,
        "gate_b": gb.reshape(1, -1),
        "proj_wt": pw.T, "proj_b": pb.reshape(1, -1),
    }


def pack_params(raw, hidden_size):
    """Pre-pack raw params into the kernel-friendly layout (split gates,
    block-diagonal W_hh, folded r/z biases, split gate_proj weights)."""
    H = hidden_size
    layers = []
    for (fwd, bwd) in raw["gru"]:
        witf, whtf, bif, bhf = fwd
        witb, whtb, bib, bhb = bwd
        lp = {"H": H}
        for g, name in enumerate(("r", "z", "n")):
            sl = slice(g * H, (g + 1) * H)
            lp[f"wi_{name}_f"] = witf[:, sl]
            lp[f"wi_{name}_b"] = witb[:, sl]
            blk = jnp.zeros((2 * H, 2 * H), jnp.float32)
            blk = blk.at[:H, :H].set(whtf[:, sl]).at[H:, H:].set(whtb[:, sl])
            lp[f"wh_{name}"] = blk

        def cat(a, b):
            return jnp.concatenate([a, b])

        lp["b_r"] = cat(bif[0, 0:H] + bhf[0, 0:H],
                        bib[0, 0:H] + bhb[0, 0:H])[None, None, :]
        lp["b_z"] = cat(bif[0, H:2 * H] + bhf[0, H:2 * H],
                        bib[0, H:2 * H] + bhb[0, H:2 * H])[None, None, :]
        lp["b_n"] = cat(bif[0, 2 * H:], bib[0, 2 * H:])[None, None, :]
        lp["bhn"] = cat(bhf[0, 2 * H:], bhb[0, 2 * H:])[None, :]
        layers.append(lp)

    w1t = raw["gate_w1t"]
    return {
        "H": H, "gru": layers,
        "gate_wff": w1t[:H, :H], "gate_wbf": w1t[H:, :H],
        "gate_wfb": w1t[:H, H:], "gate_wbb": w1t[H:, H:],
        "gate_w2t": raw["gate_w2t"], "gate_b": raw["gate_b"],
        "proj_wt": raw["proj_wt"], "proj_b": raw["proj_b"],
    }


# ----------------------------------------------------------------------------
# pure-JAX reference (for correctness check) -- uses the raw parameter layout
# ----------------------------------------------------------------------------
def _ref_gru_cell(x, h, wit, wht, bi, bh):
    H = h.shape[-1]
    gi = x @ wit + bi
    gh = h @ wht + bh
    r = jax.nn.sigmoid(gi[:, :H] + gh[:, :H])
    z = jax.nn.sigmoid(gi[:, H:2 * H] + gh[:, H:2 * H])
    n = jnp.tanh(gi[:, 2 * H:] + r * gh[:, 2 * H:])
    return (1.0 - z) * n + z * h


def _ref_bigru(x, lengths, gru_layers):
    B, T, _ = x.shape
    mask = (np.arange(T)[None, :] < np.asarray(lengths)[:, None]).astype(np.float32)
    inp = x
    finals = []
    for (fwd, bwd) in gru_layers:
        outs, fins = [], []
        for d, (wit, wht, bi, bh) in enumerate((fwd, bwd)):
            H = wht.shape[0]
            h = jnp.zeros((B, H), jnp.float32)
            cols = [None] * T
            order = range(T) if d == 0 else range(T - 1, -1, -1)
            for t in order:
                m = jnp.asarray(mask[:, t:t + 1])
                hn = _ref_gru_cell(inp[:, t, :], h, wit, wht, bi, bh)
                h = m * hn + (1.0 - m) * h
                cols[t] = h * m
            outs.append(jnp.stack(cols, axis=1))
            fins.append(h)
        inp = jnp.concatenate(outs, axis=-1)
        finals.append(tuple(fins))
    return inp, finals


def _ref_encoder(params, src_embed, src_lengths, user_embed):
    T_out = int(np.max(np.asarray(src_lengths)))
    enc_hidden, _ = _ref_bigru(src_embed, src_lengths, params["gru"])
    enc_hidden = enc_hidden[:, :T_out, :]
    B, T, _ = enc_hidden.shape
    usr = jnp.broadcast_to(user_embed[:, None, :], (B, T, user_embed.shape[-1]))
    g = jax.nn.sigmoid(enc_hidden @ params["gate_w1t"] + usr @ params["gate_w2t"]
                       + params["gate_b"])
    enc_hidden = enc_hidden * g
    final = enc_hidden[:, -1, :] @ params["proj_wt"] + params["proj_b"]
    return final[None], enc_hidden, final[:, None, :]


# ----------------------------------------------------------------------------
if __name__ == "__main__":
    B, M = 2, 2                  # batch_size, mem_size
    E, H, L = 16, 32, 1          # embed_dim, hidden_size, num_layers
    S, Sr = 8, 6                 # src seq len, review seq len

    root = jax.random.PRNGKey(0)
    kp, k1, k2, k3 = jax.random.split(root, 4)
    raw_params = init_params(kp, E, H, L)
    params = pack_params(raw_params, H)

    src_embed = jax.random.normal(k1, (B, S, E), jnp.float32)
    src_lengths = np.array([8, 5], dtype=np.int32)
    u_review = jax.random.normal(k2, (B * M, Sr, E), jnp.float32)
    u_review_lens = np.array([6, 3, 4, 6], dtype=np.int32)
    user_embed = jax.random.normal(k3, (B, E), jnp.float32)

    hidden, encoder_hidden, context_hidden = encoder_forward(
        params, src_embed, src_lengths, u_review, u_review_lens, user_embed,
        batch_size=B, mem_size=M)
    jax.block_until_ready((hidden, encoder_hidden, context_hidden))

    assert hidden.shape == (1, B, H)
    assert encoder_hidden.shape == (B, int(src_lengths.max()), 2 * H)
    assert context_hidden.shape == (B, 1, H)

    ref = _ref_encoder(raw_params, src_embed, src_lengths, user_embed)
    for got, exp in zip((hidden, encoder_hidden, context_hidden), ref):
        np.testing.assert_allclose(np.asarray(got), np.asarray(exp),
                                   rtol=5e-3, atol=5e-3)

    # Also verify the finals-only kernel path used for the review GRU.
    _, _, rev_finals = bidirectional_gru(
        u_review, u_review_lens, params["gru"], need_seq=False)
    _, ref_rev = _ref_bigru(u_review, u_review_lens, raw_params["gru"])
    np.testing.assert_allclose(
        np.asarray(rev_finals[-1]),
        np.asarray(jnp.concatenate(list(ref_rev[-1]), axis=-1)),
        rtol=5e-3, atol=5e-3)

    print("KERNEL_OK")
</pallas_src>

<mosaic_0001>
module attributes {stable_mosaic.version = 11 : i64} {
  func.func @_bigru_chunk_kernel(%arg0: i32, %arg1: memref<2x1xi32, #tpu.memory_space<vmem>>, %arg2: memref<8x2x64xf32, #tpu.memory_space<vmem>>, %arg3: memref<8x2x64xf32, #tpu.memory_space<vmem>>, %arg4: memref<8x2x64xf32, #tpu.memory_space<vmem>>, %arg5: memref<64x64xf32, #tpu.memory_space<vmem>>, %arg6: memref<64x64xf32, #tpu.memory_space<vmem>>, %arg7: memref<64x64xf32, #tpu.memory_space<vmem>>, %arg8: memref<1x64xf32, #tpu.memory_space<vmem>>, %arg9: memref<8x2x32xf32, #tpu.memory_space<vmem>>, %arg10: memref<8x2x32xf32, #tpu.memory_space<vmem>>, %arg11: memref<2x64xf32, #tpu.memory_space<vmem>>, %arg12: memref<2x64xf32, #tpu.memory_space<vmem>>) attributes {dimension_semantics = [#tpu.dimension_semantics<arbitrary>], iteration_bounds = array<i64: 1>, scalar_prefetch = 0 : i64, scratch_operands = 1 : i64, tpu.core_type = #tpu.core_type<tc>, window_params = [{pipeline_mode = #tpu.pipeline_mode<synchronous>, transform_indices = @transform_0, window_bounds = array<i64: 2, 1>}, {transform_indices = @transform_1, window_bounds = array<i64: 8, 2, 64>}, {transform_indices = @transform_2, window_bounds = array<i64: 8, 2, 64>}, {transform_indices = @transform_3, window_bounds = array<i64: 8, 2, 64>}, {pipeline_mode = #tpu.pipeline_mode<synchronous>, transform_indices = @transform_4, window_bounds = array<i64: 64, 64>}, {pipeline_mode = #tpu.pipeline_mode<synchronous>, transform_indices = @transform_5, window_bounds = array<i64: 64, 64>}, {pipeline_mode = #tpu.pipeline_mode<synchronous>, transform_indices = @transform_6, window_bounds = array<i64: 64, 64>}, {pipeline_mode = #tpu.pipeline_mode<synchronous>, transform_indices = @transform_7, window_bounds = array<i64: 1, 64>}, {transform_indices = @transform_8, window_bounds = array<i64: 8, 2, 32>}, {transform_indices = @transform_9, window_bounds = array<i64: 8, 2, 32>}, {pipeline_mode = #tpu.pipeline_mode<synchronous>, transform_indices = @transform_10, window_bounds = array<i64: 2, 64>}]} {
    %c0_i32 = arith.constant 0 : i32
    %0 = arith.cmpi eq, %arg0, %c0_i32 : i32
    %1 = arith.extui %0 : i1 to i32
    %c0_i32_0 = arith.constant 0 : i32
    %2 = arith.cmpi ne, %1, %c0_i32_0 : i32
    scf.if %2 {
      %cst_200 = arith.constant 0.000000e+00 : f32
      %456 = vector.broadcast %cst_200 : f32 to vector<2x64xf32>
      %c0_201 = arith.constant 0 : index
      %c0_202 = arith.constant 0 : index
      %457 = vector.load %arg12[%c0_201, %c0_202] : memref<2x64xf32, #tpu.memory_space<vmem>>, vector<2x64xf32>
      tpu.vector_store %arg12[%c0_201, %c0_202], %456 {strides = array<i32>} : memref<2x64xf32, #tpu.memory_space<vmem>>, vector<2x64xf32>,
    } else {
    }
    %c0 = arith.constant 0 : index
    %c0_1 = arith.constant 0 : index
    %3 = vector.load %arg1[%c0, %c0_1] : memref<2x1xi32, #tpu.memory_space<vmem>>, vector<2x1xi32>
    %c0_2 = arith.constant 0 : index
    %c0_3 = arith.constant 0 : index
    %4 = vector.load %arg5[%c0_2, %c0_3] : memref<64x64xf32, #tpu.memory_space<vmem>>, vector<64x64xf32>
    %c0_4 = arith.constant 0 : index
    %c0_5 = arith.constant 0 : index
    %5 = vector.load %arg6[%c0_4, %c0_5] : memref<64x64xf32, #tpu.memory_space<vmem>>, vector<64x64xf32>
    %c0_6 = arith.constant 0 : index
    %c0_7 = arith.constant 0 : index
    %6 = vector.load %arg7[%c0_6, %c0_7] : memref<64x64xf32, #tpu.memory_space<vmem>>, vector<64x64xf32>
    %c0_8 = arith.constant 0 : index
    %c0_9 = arith.constant 0 : index
    %7 = vector.load %arg8[%c0_8, %c0_9] : memref<1x64xf32, #tpu.memory_space<vmem>>, vector<1x64xf32>
    %8 = tpu.iota {dimensions = array<i32: 1>} : vector<2x64xi32>
    %c32_i32 = arith.constant 32 : i32
    %9 = vector.broadcast %c32_i32 : i32 to vector<2x64xi32>
    %10 = arith.cmpi slt, %8, %9 : vector<2x64xi32>
    %c0_10 = arith.constant 0 : index
    %c0_11 = arith.constant 0 : index
    %11 = vector.load %arg12[%c0_10, %c0_11] : memref<2x64xf32, #tpu.memory_space<vmem>>, vector<2x64xf32>
    %c8_i32 = arith.constant 8 : i32
    %12 = arith.muli %arg0, %c8_i32 : i32
    %c0_i32_12 = arith.constant 0 : i32
    %13 = arith.addi %12, %c0_i32_12 : i32
    %cst = arith.constant dense<0.000000e+00> : vector<2x64xf32>
    %14 = tpu.matmul %11, %4, %cst {dimension_numbers = #tpu.dot_dimension_numbers<[1], [0], [0], [1], [0, 0, 1, 1], [], []>} : vector<2x64xf32>, vector<64x64xf32>, vector<2x64xf32> -> vector<2x64xf32>
    %cst_13 = arith.constant dense<0.000000e+00> : vector<2x64xf32>
    %15 = tpu.matmul %11, %5, %cst_13 {dimension_numbers = #tpu.dot_dimension_numbers<[1], [0], [0], [1], [0, 0, 1, 1], [], []>} : vector<2x64xf32>, vector<64x64xf32>, vector<2x64xf32> -> vector<2x64xf32>
    %cst_14 = arith.constant dense<0.000000e+00> : vector<2x64xf32>
    %16 = tpu.matmul %11, %6, %cst_14 {dimension_numbers = #tpu.dot_dimension_numbers<[1], [0], [0], [1], [0, 0, 1, 1], [], []>} : vector<2x64xf32>, vector<64x64xf32>, vector<2x64xf32> -> vector<2x64xf32>
    %17 = vector.broadcast %7 : vector<1x64xf32> to vector<2x64xf32>
    %18 = arith.addf %16, %17 : vector<2x64xf32>
    %c0_15 = arith.constant 0 : index
    %c0_16 = arith.constant 0 : index
    %c0_17 = arith.constant 0 : index
    %19 = vector.load %arg2[%c0_15, %c0_16, %c0_17] : memref<8x2x64xf32, #tpu.memory_space<vmem>>, vector<1x2x64xf32>
    %20 = vector.shape_cast %19 : vector<1x2x64xf32> to vector<2x64xf32>
    %21 = arith.addf %20, %14 : vector<2x64xf32>
    %22 = arith.negf %21 : vector<2x64xf32>
    %23 = math.exp %22 : vector<2x64xf32>
    %cst_18 = arith.constant 1.000000e+00 : f32
    %24 = vector.broadcast %cst_18 : f32 to vector<2x64xf32>
    %25 = arith.addf %24, %23 : vector<2x64xf32>
    %26 = arith.divf %24, %25 : vector<2x64xf32>
    %c0_19 = arith.constant 0 : index
    %c0_20 = arith.constant 0 : index
    %c0_21 = arith.constant 0 : index
    %27 = vector.load %arg3[%c0_19, %c0_20, %c0_21] : memref<8x2x64xf32, #tpu.memory_space<vmem>>, vector<1x2x64xf32>
    %28 = vector.shape_cast %27 : vector<1x2x64xf32> to vector<2x64xf32>
    %29 = arith.addf %28, %15 : vector<2x64xf32>
    %30 = arith.negf %29 : vector<2x64xf32>
    %31 = math.exp %30 : vector<2x64xf32>
    %cst_22 = arith.constant 1.000000e+00 : f32
    %32 = vector.broadcast %cst_22 : f32 to vector<2x64xf32>
    %33 = arith.addf %32, %31 : vector<2x64xf32>
    %34 = arith.divf %32, %33 : vector<2x64xf32>
    %c0_23 = arith.constant 0 : index
    %c0_24 = arith.constant 0 : index
    %c0_25 = arith.constant 0 : index
    %35 = vector.load %arg4[%c0_23, %c0_24, %c0_25] : memref<8x2x64xf32, #tpu.memory_space<vmem>>, vector<1x2x64xf32>
    %36 = vector.shape_cast %35 : vector<1x2x64xf32> to vector<2x64xf32>
    %37 = arith.mulf %26, %18 : vector<2x64xf32>
    %38 = arith.addf %36, %37 : vector<2x64xf32>
    %39 = math.tanh %38 : vector<2x64xf32>
    %cst_26 = arith.constant 1.000000e+00 : f32
    %40 = vector.broadcast %cst_26 : f32 to vector<2x64xf32>
    %41 = arith.subf %40, %34 : vector<2x64xf32>
    %42 = arith.mulf %41, %39 : vector<2x64xf32>
    %43 = arith.mulf %34, %11 : vector<2x64xf32>
    %44 = arith.addf %42, %43 : vector<2x64xf32>
    %c7_i32 = arith.constant 7 : i32
    %45 = arith.subi %c7_i32, %13 : i32
    %46 = vector.broadcast %13 : i32 to vector<2x64xi32>
    %47 = vector.broadcast %45 : i32 to vector<2x64xi32>
    %48 = arith.select %10, %46, %47 : vector<2x64xi1>, vector<2x64xi32>
    %49 = vector.broadcast %3 : vector<2x1xi32> to vector<2x64xi32>
    %50 = arith.cmpi slt, %48, %49 : vector<2x64xi32>
    %51 = arith.extui %50 : vector<2x64xi1> to vector<2x64xi32>
    %52 = arith.sitofp %51 : vector<2x64xi32> to vector<2x64xf32>
    %53 = arith.mulf %52, %44 : vector<2x64xf32>
    %cst_27 = arith.constant 1.000000e+00 : f32
    %54 = vector.broadcast %cst_27 : f32 to vector<2x64xf32>
    %55 = arith.subf %54, %52 : vector<2x64xf32>
    %56 = arith.mulf %55, %11 : vector<2x64xf32>
    %57 = arith.addf %53, %56 : vector<2x64xf32>
    %58 = arith.mulf %57, %52 : vector<2x64xf32>
    %59 = vector.extract_strided_slice %58 {offsets = [0, 0], sizes = [2, 32], strides = [1, 1]} : vector<2x64xf32> to vector<2x32xf32>
    %c0_28 = arith.constant 0 : index
    %c0_29 = arith.constant 0 : index
    %c0_30 = arith.constant 0 : index
    %60 = vector.load %arg9[%c0_28, %c0_29, %c0_30] : memref<8x2x32xf32, #tpu.memory_space<vmem>>, vector<1x2x32xf32>
    %61 = vector.shape_cast %60 : vector<1x2x32xf32> to vector<2x32xf32>
    %62 = vector.shape_cast %59 : vector<2x32xf32> to vector<1x2x32xf32>
    tpu.vector_store %arg9[%c0_28, %c0_29, %c0_30], %62 {strides = array<i32>} : memref<8x2x32xf32, #tpu.memory_space<vmem>>, vector<1x2x32xf32>,
    %63 = vector.extract_strided_slice %58 {offsets = [0, 32], sizes = [2, 32], strides = [1, 1]} : vector<2x64xf32> to vector<2x32xf32>
    %c7 = arith.constant 7 : index
    %c0_31 = arith.constant 0 : index
    %c0_32 = arith.constant 0 : index
    %64 = vector.load %arg10[%c7, %c0_31, %c0_32] : memref<8x2x32xf32, #tpu.memory_space<vmem>>, vector<1x2x32xf32>
    %65 = vector.shape_cast %64 : vector<1x2x32xf32> to vector<2x32xf32>
    %66 = vector.shape_cast %63 : vector<2x32xf32> to vector<1x2x32xf32>
    tpu.vector_store %arg10[%c7, %c0_31, %c0_32], %66 {strides = array<i32>} : memref<8x2x32xf32, #tpu.memory_space<vmem>>, vector<1x2x32xf32>,
    %c8_i32_33 = arith.constant 8 : i32
    %67 = arith.muli %arg0, %c8_i32_33 : i32
    %c1_i32 = arith.constant 1 : i32
    %68 = arith.addi %67, %c1_i32 : i32
    %cst_34 = arith.constant dense<0.000000e+00> : vector<2x64xf32>
    %69 = tpu.matmul %57, %4, %cst_34 {dimension_numbers = #tpu.dot_dimension_numbers<[1], [0], [0], [1], [0, 0, 1, 1], [], []>} : vector<2x64xf32>, vector<64x64xf32>, vector<2x64xf32> -> vector<2x64xf32>
    %cst_35 = arith.constant dense<0.000000e+00> : vector<2x64xf32>
    %70 = tpu.matmul %57, %5, %cst_35 {dimension_numbers = #tpu.dot_dimension_numbers<[1], [0], [0], [1], [0, 0, 1, 1], [], []>} : vector<2x64xf32>, vector<64x64xf32>, vector<2x64xf32> -> vector<2x64xf32>
    %cst_36 = arith.constant dense<0.000000e+00> : vector<2x64xf32>
    %71 = tpu.matmul %57, %6, %cst_36 {dimension_numbers = #tpu.dot_dimension_numbers<[1], [0], [0], [1], [0, 0, 1, 1], [], []>} : vector<2x64xf32>, vector<64x64xf32>, vector<2x64xf32> -> vector<2x64xf32>
    %72 = vector.broadcast %7 : vector<1x64xf32> to vector<2x64xf32>
    %73 = arith.addf %71, %72 : vector<2x64xf32>
    %c1 = arith.constant 1 : index
    %c0_37 = arith.constant 0 : index
    %c0_38 = arith.constant 0 : index
    %74 = vector.load %arg2[%c1, %c0_37, %c0_38] : memref<8x2x64xf32, #tpu.memory_space<vmem>>, vector<1x2x64xf32>
    %75 = vector.shape_cast %74 : vector<1x2x64xf32> to vector<2x64xf32>
    %76 = arith.addf %75, %69 : vector<2x64xf32>
    %77 = arith.negf %76 : vector<2x64xf32>
    %78 = math.exp %77 : vector<2x64xf32>
    %cst_39 = arith.constant 1.000000e+00 : f32
    %79 = vector.broadcast %cst_39 : f32 to vector<2x64xf32>
    %80 = arith.addf %79, %78 : vector<2x64xf32>
    %81 = arith.divf %79, %80 : vector<2x64xf32>
    %c1_40 = arith.constant 1 : index
    %c0_41 = arith.constant 0 : index
    %c0_42 = arith.constant 0 : index
    %82 = vector.load %arg3[%c1_40, %c0_41, %c0_42] : memref<8x2x64xf32, #tpu.memory_space<vmem>>, vector<1x2x64xf32>
    %83 = vector.shape_cast %82 : vector<1x2x64xf32> to vector<2x64xf32>
    %84 = arith.addf %83, %70 : vector<2x64xf32>
    %85 = arith.negf %84 : vector<2x64xf32>
    %86 = math.exp %85 : vector<2x64xf32>
    %cst_43 = arith.constant 1.000000e+00 : f32
    %87 = vector.broadcast %cst_43 : f32 to vector<2x64xf32>
    %88 = arith.addf %87, %86 : vector<2x64xf32>
    %89 = arith.divf %87, %88 : vector<2x64xf32>
    %c1_44 = arith.constant 1 : index
    %c0_45 = arith.constant 0 : index
    %c0_46 = arith.constant 0 : index
    %90 = vector.load %arg4[%c1_44, %c0_45, %c0_46] : memref<8x2x64xf32, #tpu.memory_space<vmem>>, vector<1x2x64xf32>
    %91 = vector.shape_cast %90 : vector<1x2x64xf32> to vector<2x64xf32>
    %92 = arith.mulf %81, %73 : vector<2x64xf32>
    %93 = arith.addf %91, %92 : vector<2x64xf32>
    %94 = math.tanh %93 : vector<2x64xf32>
    %cst_47 = arith.constant 1.000000e+00 : f32
    %95 = vector.broadcast %cst_47 : f32 to vector<2x64xf32>
    %96 = arith.subf %95, %89 : vector<2x64xf32>
    %97 = arith.mulf %96, %94 : vector<2x64xf32>
    %98 = arith.mulf %89, %57 : vector<2x64xf32>
    %99 = arith.addf %97, %98 : vector<2x64xf32>
    %c7_i32_48 = arith.constant 7 : i32
    %100 = arith.subi %c7_i32_48, %68 : i32
    %101 = vector.broadcast %68 : i32 to vector<2x64xi32>
    %102 = vector.broadcast %100 : i32 to vector<2x64xi32>
    %103 = arith.select %10, %101, %102 : vector<2x64xi1>, vector<2x64xi32>
    %104 = vector.broadcast %3 : vector<2x1xi32> to vector<2x64xi32>
    %105 = arith.cmpi slt, %103, %104 : vector<2x64xi32>
    %106 = arith.extui %105 : vector<2x64xi1> to vector<2x64xi32>
    %107 = arith.sitofp %106 : vector<2x64xi32> to vector<2x64xf32>
    %108 = arith.mulf %107, %99 : vector<2x64xf32>
    %cst_49 = arith.constant 1.000000e+00 : f32
    %109 = vector.broadcast %cst_49 : f32 to vector<2x64xf32>
    %110 = arith.subf %109, %107 : vector<2x64xf32>
    %111 = arith.mulf %110, %57 : vector<2x64xf32>
    %112 = arith.addf %108, %111 : vector<2x64xf32>
    %113 = arith.mulf %112, %107 : vector<2x64xf32>
    %114 = vector.extract_strided_slice %113 {offsets = [0, 0], sizes = [2, 32], strides = [1, 1]} : vector<2x64xf32> to vector<2x32xf32>
    %c1_50 = arith.constant 1 : index
    %c0_51 = arith.constant 0 : index
    %c0_52 = arith.constant 0 : index
    %115 = vector.load %arg9[%c1_50, %c0_51, %c0_52] : memref<8x2x32xf32, #tpu.memory_space<vmem>>, vector<1x2x32xf32>
    %116 = vector.shape_cast %115 : vector<1x2x32xf32> to vector<2x32xf32>
    %117 = vector.shape_cast %114 : vector<2x32xf32> to vector<1x2x32xf32>
    tpu.vector_store %arg9[%c1_50, %c0_51, %c0_52], %117 {strides = array<i32>} : memref<8x2x32xf32, #tpu.memory_space<vmem>>, vector<1x2x32xf32>,
    %118 = vector.extract_strided_slice %113 {offsets = [0, 32], sizes = [2, 32], strides = [1, 1]} : vector<2x64xf32> to vector<2x32xf32>
    %c6 = arith.constant 6 : index
    %c0_53 = arith.constant 0 : index
    %c0_54 = arith.constant 0 : index
    %119 = vector.load %arg10[%c6, %c0_53, %c0_54] : memref<8x2x32xf32, #tpu.memory_space<vmem>>, vector<1x2x32xf32>
    %120 = vector.shape_cast %119 : vector<1x2x32xf32> to vector<2x32xf32>
    %121 = vector.shape_cast %118 : vector<2x32xf32> to vector<1x2x32xf32>
    tpu.vector_store %arg10[%c6, %c0_53, %c0_54], %121 {strides = array<i32>} : memref<8x2x32xf32, #tpu.memory_space<vmem>>, vector<1x2x32xf32>,
    %c8_i32_55 = arith.constant 8 : i32
    %122 = arith.muli %arg0, %c8_i32_55 : i32
    %c2_i32 = arith.constant 2 : i32
    %123 = arith.addi %122, %c2_i32 : i32
    %cst_56 = arith.constant dense<0.000000e+00> : vector<2x64xf32>
    %124 = tpu.matmul %112, %4, %cst_56 {dimension_numbers = #tpu.dot_dimension_numbers<[1], [0], [0], [1], [0, 0, 1, 1], [], []>} : vector<2x64xf32>, vector<64x64xf32>, vector<2x64xf32> -> vector<2x64xf32>
    %cst_57 = arith.constant dense<0.000000e+00> : vector<2x64xf32>
    %125 = tpu.matmul %112, %5, %cst_57 {dimension_numbers = #tpu.dot_dimension_numbers<[1], [0], [0], [1], [0, 0, 1, 1], [], []>} : vector<2x64xf32>, vector<64x64xf32>, vector<2x64xf32> -> vector<2x64xf32>
    %cst_58 = arith.constant dense<0.000000e+00> : vector<2x64xf32>
    %126 = tpu.matmul %112, %6, %cst_58 {dimension_numbers = #tpu.dot_dimension_numbers<[1], [0], [0], [1], [0, 0, 1, 1], [], []>} : vector<2x64xf32>, vector<64x64xf32>, vector<2x64xf32> -> vector<2x64xf32>
    %127 = vector.broadcast %7 : vector<1x64xf32> to vector<2x64xf32>
    %128 = arith.addf %126, %127 : vector<2x64xf32>
    %c2 = arith.constant 2 : index
    %c0_59 = arith.constant 0 : index
    %c0_60 = arith.constant 0 : index
    %129 = vector.load %arg2[%c2, %c0_59, %c0_60] : memref<8x2x64xf32, #tpu.memory_space<vmem>>, vector<1x2x64xf32>
    %130 = vector.shape_cast %129 : vector<1x2x64xf32> to vector<2x64xf32>
    %131 = arith.addf %130, %124 : vector<2x64xf32>
    %132 = arith.negf %131 : vector<2x64xf32>
    %133 = math.exp %132 : vector<2x64xf32>
    %cst_61 = arith.constant 1.000000e+00 : f32
    %134 = vector.broadcast %cst_61 : f32 to vector<2x64xf32>
    %135 = arith.addf %134, %133 : vector<2x64xf32>
    %136 = arith.divf %134, %135 : vector<2x64xf32>
    %c2_62 = arith.constant 2 : index
    %c0_63 = arith.constant 0 : index
    %c0_64 = arith.constant 0 : index
    %137 = vector.load %arg3[%c2_62, %c0_63, %c0_64] : memref<8x2x64xf32, #tpu.memory_space<vmem>>, vector<1x2x64xf32>
    %138 = vector.shape_cast %137 : vector<1x2x64xf32> to vector<2x64xf32>
    %139 = arith.addf %138, %125 : vector<2x64xf32>
    %140 = arith.negf %139 : vector<2x64xf32>
    %141 = math.exp %140 : vector<2x64xf32>
    %cst_65 = arith.constant 1.000000e+00 : f32
    %142 = vector.broadcast %cst_65 : f32 to vector<2x64xf32>
    %143 = arith.addf %142, %141 : vector<2x64xf32>
    %144 = arith.divf %142, %143 : vector<2x64xf32>
    %c2_66 = arith.constant 2 : index
    %c0_67 = arith.constant 0 : index
    %c0_68 = arith.constant 0 : index
    %145 = vector.load %arg4[%c2_66, %c0_67, %c0_68] : memref<8x2x64xf32, #tpu.memory_space<vmem>>, vector<1x2x64xf32>
    %146 = vector.shape_cast %145 : vector<1x2x64xf32> to vector<2x64xf32>
    %147 = arith.mulf %136, %128 : vector<2x64xf32>
    %148 = arith.addf %146, %147 : vector<2x64xf32>
    %149 = math.tanh %148 : vector<2x64xf32>
    %cst_69 = arith.constant 1.000000e+00 : f32
    %150 = vector.broadcast %cst_69 : f32 to vector<2x64xf32>
    %151 = arith.subf %150, %144 : vector<2x64xf32>
    %152 = arith.mulf %151, %149 : vector<2x64xf32>
    %153 = arith.mulf %144, %112 : vector<2x64xf32>
    %154 = arith.addf %152, %153 : vector<2x64xf32>
    %c7_i32_70 = arith.constant 7 : i32
    %155 = arith.subi %c7_i32_70, %123 : i32
    %156 = vector.broadcast %123 : i32 to vector<2x64xi32>
    %157 = vector.broadcast %155 : i32 to vector<2x64xi32>
    %158 = arith.select %10, %156, %157 : vector<2x64xi1>, vector<2x64xi32>
    %159 = vector.broadcast %3 : vector<2x1xi32> to vector<2x64xi32>
    %160 = arith.cmpi slt, %158, %159 : vector<2x64xi32>
    %161 = arith.extui %160 : vector<2x64xi1> to vector<2x64xi32>
    %162 = arith.sitofp %161 : vector<2x64xi32> to vector<2x64xf32>
    %163 = arith.mulf %162, %154 : vector<2x64xf32>
    %cst_71 = arith.constant 1.000000e+00 : f32
    %164 = vector.broadcast %cst_71 : f32 to vector<2x64xf32>
    %165 = arith.subf %164, %162 : vector<2x64xf32>
    %166 = arith.mulf %165, %112 : vector<2x64xf32>
    %167 = arith.addf %163, %166 : vector<2x64xf32>
    %168 = arith.mulf %167, %162 : vector<2x64xf32>
    %169 = vector.extract_strided_slice %168 {offsets = [0, 0], sizes = [2, 32], strides = [1, 1]} : vector<2x64xf32> to vector<2x32xf32>
    %c2_72 = arith.constant 2 : index
    %c0_73 = arith.constant 0 : index
    %c0_74 = arith.constant 0 : index
    %170 = vector.load %arg9[%c2_72, %c0_73, %c0_74] : memref<8x2x32xf32, #tpu.memory_space<vmem>>, vector<1x2x32xf32>
    %171 = vector.shape_cast %170 : vector<1x2x32xf32> to vector<2x32xf32>
    %172 = vector.shape_cast %169 : vector<2x32xf32> to vector<1x2x32xf32>
    tpu.vector_store %arg9[%c2_72, %c0_73, %c0_74], %172 {strides = array<i32>} : memref<8x2x32xf32, #tpu.memory_space<vmem>>, vector<1x2x32xf32>,
    %173 = vector.extract_strided_slice %168 {offsets = [0, 32], sizes = [2, 32], strides = [1, 1]} : vector<2x64xf32> to vector<2x32xf32>
    %c5 = arith.constant 5 : index
    %c0_75 = arith.constant 0 : index
    %c0_76 = arith.constant 0 : index
    %174 = vector.load %arg10[%c5, %c0_75, %c0_76] : memref<8x2x32xf32, #tpu.memory_space<vmem>>, vector<1x2x32xf32>
    %175 = vector.shape_cast %174 : vector<1x2x32xf32> to vector<2x32xf32>
    %176 = vector.shape_cast %173 : vector<2x32xf32> to vector<1x2x32xf32>
    tpu.vector_store %arg10[%c5, %c0_75, %c0_76], %176 {strides = array<i32>} : memref<8x2x32xf32, #tpu.memory_space<vmem>>, vector<1x2x32xf32>,
    %c8_i32_77 = arith.constant 8 : i32
    %177 = arith.muli %arg0, %c8_i32_77 : i32
    %c3_i32 = arith.constant 3 : i32
    %178 = arith.addi %177, %c3_i32 : i32
    %cst_78 = arith.constant dense<0.000000e+00> : vector<2x64xf32>
    %179 = tpu.matmul %167, %4, %cst_78 {dimension_numbers = #tpu.dot_dimension_numbers<[1], [0], [0], [1], [0, 0, 1, 1], [], []>} : vector<2x64xf32>, vector<64x64xf32>, vector<2x64xf32> -> vector<2x64xf32>
    %cst_79 = arith.constant dense<0.000000e+00> : vector<2x64xf32>
    %180 = tpu.matmul %167, %5, %cst_79 {dimension_numbers = #tpu.dot_dimension_numbers<[1], [0], [0], [1], [0, 0, 1, 1], [], []>} : vector<2x64xf32>, vector<64x64xf32>, vector<2x64xf32> -> vector<2x64xf32>
    %cst_80 = arith.constant dense<0.000000e+00> : vector<2x64xf32>
    %181 = tpu.matmul %167, %6, %cst_80 {dimension_numbers = #tpu.dot_dimension_numbers<[1], [0], [0], [1], [0, 0, 1, 1], [], []>} : vector<2x64xf32>, vector<64x64xf32>, vector<2x64xf32> -> vector<2x64xf32>
    %182 = vector.broadcast %7 : vector<1x64xf32> to vector<2x64xf32>
    %183 = arith.addf %181, %182 : vector<2x64xf32>
    %c3 = arith.constant 3 : index
    %c0_81 = arith.constant 0 : index
    %c0_82 = arith.constant 0 : index
    %184 = vector.load %arg2[%c3, %c0_81, %c0_82] : memref<8x2x64xf32, #tpu.memory_space<vmem>>, vector<1x2x64xf32>
    %185 = vector.shape_cast %184 : vector<1x2x64xf32> to vector<2x64xf32>
    %186 = arith.addf %185, %179 : vector<2x64xf32>
    %187 = arith.negf %186 : vector<2x64xf32>
    %188 = math.exp %187 : vector<2x64xf32>
    %cst_83 = arith.constant 1.000000e+00 : f32
    %189 = vector.broadcast %cst_83 : f32 to vector<2x64xf32>
    %190 = arith.addf %189, %188 : vector<2x64xf32>
    %191 = arith.divf %189, %190 : vector<2x64xf32>
    %c3_84 = arith.constant 3 : index
    %c0_85 = arith.constant 0 : index
    %c0_86 = arith.constant 0 : index
    %192 = vector.load %arg3[%c3_84, %c0_85, %c0_86] : memref<8x2x64xf32, #tpu.memory_space<vmem>>, vector<1x2x64xf32>
    %193 = vector.shape_cast %192 : vector<1x2x64xf32> to vector<2x64xf32>
    %194 = arith.addf %193, %180 : vector<2x64xf32>
    %195 = arith.negf %194 : vector<2x64xf32>
    %196 = math.exp %195 : vector<2x64xf32>
    %cst_87 = arith.constant 1.000000e+00 : f32
    %197 = vector.broadcast %cst_87 : f32 to vector<2x64xf32>
    %198 = arith.addf %197, %196 : vector<2x64xf32>
    %199 = arith.divf %197, %198 : vector<2x64xf32>
    %c3_88 = arith.constant 3 : index
    %c0_89 = arith.constant 0 : index
    %c0_90 = arith.constant 0 : index
    %200 = vector.load %arg4[%c3_88, %c0_89, %c0_90] : memref<8x2x64xf32, #tpu.memory_space<vmem>>, vector<1x2x64xf32>
    %201 = vector.shape_cast %200 : vector<1x2x64xf32> to vector<2x64xf32>
    %202 = arith.mulf %191, %183 : vector<2x64xf32>
    %203 = arith.addf %201, %202 : vector<2x64xf32>
    %204 = math.tanh %203 : vector<2x64xf32>
    %cst_91 = arith.constant 1.000000e+00 : f32
    %205 = vector.broadcast %cst_91 : f32 to vector<2x64xf32>
    %206 = arith.subf %205, %199 : vector<2x64xf32>
    %207 = arith.mulf %206, %204 : vector<2x64xf32>
    %208 = arith.mulf %199, %167 : vector<2x64xf32>
    %209 = arith.addf %207, %208 : vector<2x64xf32>
    %c7_i32_92 = arith.constant 7 : i32
    %210 = arith.subi %c7_i32_92, %178 : i32
    %211 = vector.broadcast %178 : i32 to vector<2x64xi32>
    %212 = vector.broadcast %210 : i32 to vector<2x64xi32>
    %213 = arith.select %10, %211, %212 : vector<2x64xi1>, vector<2x64xi32>
    %214 = vector.broadcast %3 : vector<2x1xi32> to vector<2x64xi32>
    %215 = arith.cmpi slt, %213, %214 : vector<2x64xi32>
    %216 = arith.extui %215 : vector<2x64xi1> to vector<2x64xi32>
    %217 = arith.sitofp %216 : vector<2x64xi32> to vector<2x64xf32>
    %218 = arith.mulf %217, %209 : vector<2x64xf32>
    %cst_93 = arith.constant 1.000000e+00 : f32
    %219 = vector.broadcast %cst_93 : f32 to vector<2x64xf32>
    %220 = arith.subf %219, %217 : vector<2x64xf32>
    %221 = arith.mulf %220, %167 : vector<2x64xf32>
    %222 = arith.addf %218, %221 : vector<2x64xf32>
    %223 = arith.mulf %222, %217 : vector<2x64xf32>
    %224 = vector.extract_strided_slice %223 {offsets = [0, 0], sizes = [2, 32], strides = [1, 1]} : vector<2x64xf32> to vector<2x32xf32>
    %c3_94 = arith.constant 3 : index
    %c0_95 = arith.constant 0 : index
    %c0_96 = arith.constant 0 : index
    %225 = vector.load %arg9[%c3_94, %c0_95, %c0_96] : memref<8x2x32xf32, #tpu.memory_space<vmem>>, vector<1x2x32xf32>
    %226 = vector.shape_cast %225 : vector<1x2x32xf32> to vector<2x32xf32>
    %227 = vector.shape_cast %224 : vector<2x32xf32> to vector<1x2x32xf32>
    tpu.vector_store %arg9[%c3_94, %c0_95, %c0_96], %227 {strides = array<i32>} : memref<8x2x32xf32, #tpu.memory_space<vmem>>, vector<1x2x32xf32>,
    %228 = vector.extract_strided_slice %223 {offsets = [0, 32], sizes = [2, 32], strides = [1, 1]} : vector<2x64xf32> to vector<2x32xf32>
    %c4 = arith.constant 4 : index
    %c0_97 = arith.constant 0 : index
    %c0_98 = arith.constant 0 : index
    %229 = vector.load %arg10[%c4, %c0_97, %c0_98] : memref<8x2x32xf32, #tpu.memory_space<vmem>>, vector<1x2x32xf32>
    %230 = vector.shape_cast %229 : vector<1x2x32xf32> to vector<2x32xf32>
    %231 = vector.shape_cast %228 : vector<2x32xf32> to vector<1x2x32xf32>
    tpu.vector_store %arg10[%c4, %c0_97, %c0_98], %231 {strides = array<i32>} : memref<8x2x32xf32, #tpu.memory_space<vmem>>, vector<1x2x32xf32>,
    %c8_i32_99 = arith.constant 8 : i32
    %232 = arith.muli %arg0, %c8_i32_99 : i32
    %c4_i32 = arith.constant 4 : i32
    %233 = arith.addi %232, %c4_i32 : i32
    %cst_100 = arith.constant dense<0.000000e+00> : vector<2x64xf32>
    %234 = tpu.matmul %222, %4, %cst_100 {dimension_numbers = #tpu.dot_dimension_numbers<[1], [0], [0], [1], [0, 0, 1, 1], [], []>} : vector<2x64xf32>, vector<64x64xf32>, vector<2x64xf32> -> vector<2x64xf32>
    %cst_101 = arith.constant dense<0.000000e+00> : vector<2x64xf32>
    %235 = tpu.matmul %222, %5, %cst_101 {dimension_numbers = #tpu.dot_dimension_numbers<[1], [0], [0], [1], [0, 0, 1, 1], [], []>} : vector<2x64xf32>, vector<64x64xf32>, vector<2x64xf32> -> vector<2x64xf32>
    %cst_102 = arith.constant dense<0.000000e+00> : vector<2x64xf32>
    %236 = tpu.matmul %222, %6, %cst_102 {dimension_numbers = #tpu.dot_dimension_numbers<[1], [0], [0], [1], [0, 0, 1, 1], [], []>} : vector<2x64xf32>, vector<64x64xf32>, vector<2x64xf32> -> vector<2x64xf32>
    %237 = vector.broadcast %7 : vector<1x64xf32> to vector<2x64xf32>
    %238 = arith.addf %236, %237 : vector<2x64xf32>
    %c4_103 = arith.constant 4 : index
    %c0_104 = arith.constant 0 : index
    %c0_105 = arith.constant 0 : index
    %239 = vector.load %arg2[%c4_103, %c0_104, %c0_105] : memref<8x2x64xf32, #tpu.memory_space<vmem>>, vector<1x2x64xf32>
    %240 = vector.shape_cast %239 : vector<1x2x64xf32> to vector<2x64xf32>
    %241 = arith.addf %240, %234 : vector<2x64xf32>
    %242 = arith.negf %241 : vector<2x64xf32>
    %243 = math.exp %242 : vector<2x64xf32>
    %cst_106 = arith.constant 1.000000e+00 : f32
    %244 = vector.broadcast %cst_106 : f32 to vector<2x64xf32>
    %245 = arith.addf %244, %243 : vector<2x64xf32>
    %246 = arith.divf %244, %245 : vector<2x64xf32>
    %c4_107 = arith.constant 4 : index
    %c0_108 = arith.constant 0 : index
    %c0_109 = arith.constant 0 : index
    %247 = vector.load %arg3[%c4_107, %c0_108, %c0_109] : memref<8x2x64xf32, #tpu.memory_space<vmem>>, vector<1x2x64xf32>
    %248 = vector.shape_cast %247 : vector<1x2x64xf32> to vector<2x64xf32>
    %249 = arith.addf %248, %235 : vector<2x64xf32>
    %250 = arith.negf %249 : vector<2x64xf32>
    %251 = math.exp %250 : vector<2x64xf32>
    %cst_110 = arith.constant 1.000000e+00 : f32
    %252 = vector.broadcast %cst_110 : f32 to vector<2x64xf32>
    %253 = arith.addf %252, %251 : vector<2x64xf32>
    %254 = arith.divf %252, %253 : vector<2x64xf32>
    %c4_111 = arith.constant 4 : index
    %c0_112 = arith.constant 0 : index
    %c0_113 = arith.constant 0 : index
    %255 = vector.load %arg4[%c4_111, %c0_112, %c0_113] : memref<8x2x64xf32, #tpu.memory_space<vmem>>, vector<1x2x64xf32>
    %256 = vector.shape_cast %255 : vector<1x2x64xf32> to vector<2x64xf32>
    %257 = arith.mulf %246, %238 : vector<2x64xf32>
    %258 = arith.addf %256, %257 : vector<2x64xf32>
    %259 = math.tanh %258 : vector<2x64xf32>
    %cst_114 = arith.constant 1.000000e+00 : f32
    %260 = vector.broadcast %cst_114 : f32 to vector<2x64xf32>
    %261 = arith.subf %260, %254 : vector<2x64xf32>
    %262 = arith.mulf %261, %259 : vector<2x64xf32>
    %263 = arith.mulf %254, %222 : vector<2x64xf32>
    %264 = arith.addf %262, %263 : vector<2x64xf32>
    %c7_i32_115 = arith.constant 7 : i32
    %265 = arith.subi %c7_i32_115, %233 : i32
    %266 = vector.broadcast %233 : i32 to vector<2x64xi32>
    %267 = vector.broadcast %265 : i32 to vector<2x64xi32>
    %268 = arith.select %10, %266, %267 : vector<2x64xi1>, vector<2x64xi32>
    %269 = vector.broadcast %3 : vector<2x1xi32> to vector<2x64xi32>
    %270 = arith.cmpi slt, %268, %269 : vector<2x64xi32>
    %271 = arith.extui %270 : vector<2x64xi1> to vector<2x64xi32>
    %272 = arith.sitofp %271 : vector<2x64xi32> to vector<2x64xf32>
    %273 = arith.mulf %272, %264 : vector<2x64xf32>
    %cst_116 = arith.constant 1.000000e+00 : f32
    %274 = vector.broadcast %cst_116 : f32 to vector<2x64xf32>
    %275 = arith.subf %274, %272 : vector<2x64xf32>
    %276 = arith.mulf %275, %222 : vector<2x64xf32>
    %277 = arith.addf %273, %276 : vector<2x64xf32>
    %278 = arith.mulf %277, %272 : vector<2x64xf32>
    %279 = vector.extract_strided_slice %278 {offsets = [0, 0], sizes = [2, 32], strides = [1, 1]} : vector<2x64xf32> to vector<2x32xf32>
    %c4_117 = arith.constant 4 : index
    %c0_118 = arith.constant 0 : index
    %c0_119 = arith.constant 0 : index
    %280 = vector.load %arg9[%c4_117, %c0_118, %c0_119] : memref<8x2x32xf32, #tpu.memory_space<vmem>>, vector<1x2x32xf32>
    %281 = vector.shape_cast %280 : vector<1x2x32xf32> to vector<2x32xf32>
    %282 = vector.shape_cast %279 : vector<2x32xf32> to vector<1x2x32xf32>
    tpu.vector_store %arg9[%c4_117, %c0_118, %c0_119], %282 {strides = array<i32>} : memref<8x2x32xf32, #tpu.memory_space<vmem>>, vector<1x2x32xf32>,
    %283 = vector.extract_strided_slice %278 {offsets = [0, 32], sizes = [2, 32], strides = [1, 1]} : vector<2x64xf32> to vector<2x32xf32>
    %c3_120 = arith.constant 3 : index
    %c0_121 = arith.constant 0 : index
    %c0_122 = arith.constant 0 : index
    %284 = vector.load %arg10[%c3_120, %c0_121, %c0_122] : memref<8x2x32xf32, #tpu.memory_space<vmem>>, vector<1x2x32xf32>
    %285 = vector.shape_cast %284 : vector<1x2x32xf32> to vector<2x32xf32>
    %286 = vector.shape_cast %283 : vector<2x32xf32> to vector<1x2x32xf32>
    tpu.vector_store %arg10[%c3_120, %c0_121, %c0_122], %286 {strides = array<i32>} : memref<8x2x32xf32, #tpu.memory_space<vmem>>, vector<1x2x32xf32>,
    %c8_i32_123 = arith.constant 8 : i32
    %287 = arith.muli %arg0, %c8_i32_123 : i32
    %c5_i32 = arith.constant 5 : i32
    %288 = arith.addi %287, %c5_i32 : i32
    %cst_124 = arith.constant dense<0.000000e+00> : vector<2x64xf32>
    %289 = tpu.matmul %277, %4, %cst_124 {dimension_numbers = #tpu.dot_dimension_numbers<[1], [0], [0], [1], [0, 0, 1, 1], [], []>} : vector<2x64xf32>, vector<64x64xf32>, vector<2x64xf32> -> vector<2x64xf32>
    %cst_125 = arith.constant dense<0.000000e+00> : vector<2x64xf32>
    %290 = tpu.matmul %277, %5, %cst_125 {dimension_numbers = #tpu.dot_dimension_numbers<[1], [0], [0], [1], [0, 0, 1, 1], [], []>} : vector<2x64xf32>, vector<64x64xf32>, vector<2x64xf32> -> vector<2x64xf32>
    %cst_126 = arith.constant dense<0.000000e+00> : vector<2x64xf32>
    %291 = tpu.matmul %277, %6, %cst_126 {dimension_numbers = #tpu.dot_dimension_numbers<[1], [0], [0], [1], [0, 0, 1, 1], [], []>} : vector<2x64xf32>, vector<64x64xf32>, vector<2x64xf32> -> vector<2x64xf32>
    %292 = vector.broadcast %7 : vector<1x64xf32> to vector<2x64xf32>
    %293 = arith.addf %291, %292 : vector<2x64xf32>
    %c5_127 = arith.constant 5 : index
    %c0_128 = arith.constant 0 : index
    %c0_129 = arith.constant 0 : index
    %294 = vector.load %arg2[%c5_127, %c0_128, %c0_129] : memref<8x2x64xf32, #tpu.memory_space<vmem>>, vector<1x2x64xf32>
    %295 = vector.shape_cast %294 : vector<1x2x64xf32> to vector<2x64xf32>
    %296 = arith.addf %295, %289 : vector<2x64xf32>
    %297 = arith.negf %296 : vector<2x64xf32>
    %298 = math.exp %297 : vector<2x64xf32>
    %cst_130 = arith.constant 1.000000e+00 : f32
    %299 = vector.broadcast %cst_130 : f32 to vector<2x64xf32>
    %300 = arith.addf %299, %298 : vector<2x64xf32>
    %301 = arith.divf %299, %300 : vector<2x64xf32>
    %c5_131 = arith.constant 5 : index
    %c0_132 = arith.constant 0 : index
    %c0_133 = arith.constant 0 : index
    %302 = vector.load %arg3[%c5_131, %c0_132, %c0_133] : memref<8x2x64xf32, #tpu.memory_space<vmem>>, vector<1x2x64xf32>
    %303 = vector.shape_cast %302 : vector<1x2x64xf32> to vector<2x64xf32>
    %304 = arith.addf %303, %290 : vector<2x64xf32>
    %305 = arith.negf %304 : vector<2x64xf32>
    %306 = math.exp %305 : vector<2x64xf32>
    %cst_134 = arith.constant 1.000000e+00 : f32
    %307 = vector.broadcast %cst_134 : f32 to vector<2x64xf32>
    %308 = arith.addf %307, %306 : vector<2x64xf32>
    %309 = arith.divf %307, %308 : vector<2x64xf32>
    %c5_135 = arith.constant 5 : index
    %c0_136 = arith.constant 0 : index
    %c0_137 = arith.constant 0 : index
    %310 = vector.load %arg4[%c5_135, %c0_136, %c0_137] : memref<8x2x64xf32, #tpu.memory_space<vmem>>, vector<1x2x64xf32>
    %311 = vector.shape_cast %310 : vector<1x2x64xf32> to vector<2x64xf32>
    %312 = arith.mulf %301, %293 : vector<2x64xf32>
    %313 = arith.addf %311, %312 : vector<2x64xf32>
    %314 = math.tanh %313 : vector<2x64xf32>
    %cst_138 = arith.constant 1.000000e+00 : f32
    %315 = vector.broadcast %cst_138 : f32 to vector<2x64xf32>
    %316 = arith.subf %315, %309 : vector<2x64xf32>
    %317 = arith.mulf %316, %314 : vector<2x64xf32>
    %318 = arith.mulf %309, %277 : vector<2x64xf32>
    %319 = arith.addf %317, %318 : vector<2x64xf32>
    %c7_i32_139 = arith.constant 7 : i32
    %320 = arith.subi %c7_i32_139, %288 : i32
    %321 = vector.broadcast %288 : i32 to vector<2x64xi32>
    %322 = vector.broadcast %320 : i32 to vector<2x64xi32>
    %323 = arith.select %10, %321, %322 : vector<2x64xi1>, vector<2x64xi32>
    %324 = vector.broadcast %3 : vector<2x1xi32> to vector<2x64xi32>
    %325 = arith.cmpi slt, %323, %324 : vector<2x64xi32>
    %326 = arith.extui %325 : vector<2x64xi1> to vector<2x64xi32>
    %327 = arith.sitofp %326 : vector<2x64xi32> to vector<2x64xf32>
    %328 = arith.mulf %327, %319 : vector<2x64xf32>
    %cst_140 = arith.constant 1.000000e+00 : f32
    %329 = vector.broadcast %cst_140 : f32 to vector<2x64xf32>
    %330 = arith.subf %329, %327 : vector<2x64xf32>
    %331 = arith.mulf %330, %277 : vector<2x64xf32>
    %332 = arith.addf %328, %331 : vector<2x64xf32>
    %333 = arith.mulf %332, %327 : vector<2x64xf32>
    %334 = vector.extract_strided_slice %333 {offsets = [0, 0], sizes = [2, 32], strides = [1, 1]} : vector<2x64xf32> to vector<2x32xf32>
    %c5_141 = arith.constant 5 : index
    %c0_142 = arith.constant 0 : index
    %c0_143 = arith.constant 0 : index
    %335 = vector.load %arg9[%c5_141, %c0_142, %c0_143] : memref<8x2x32xf32, #tpu.memory_space<vmem>>, vector<1x2x32xf32>
    %336 = vector.shape_cast %335 : vector<1x2x32xf32> to vector<2x32xf32>
    %337 = vector.shape_cast %334 : vector<2x32xf32> to vector<1x2x32xf32>
    tpu.vector_store %arg9[%c5_141, %c0_142, %c0_143], %337 {strides = array<i32>} : memref<8x2x32xf32, #tpu.memory_space<vmem>>, vector<1x2x32xf32>,
    %338 = vector.extract_strided_slice %333 {offsets = [0, 32], sizes = [2, 32], strides = [1, 1]} : vector<2x64xf32> to vector<2x32xf32>
    %c2_144 = arith.constant 2 : index
    %c0_145 = arith.constant 0 : index
    %c0_146 = arith.constant 0 : index
    %339 = vector.load %arg10[%c2_144, %c0_145, %c0_146] : memref<8x2x32xf32, #tpu.memory_space<vmem>>, vector<1x2x32xf32>
    %340 = vector.shape_cast %339 : vector<1x2x32xf32> to vector<2x32xf32>
    %341 = vector.shape_cast %338 : vector<2x32xf32> to vector<1x2x32xf32>
    tpu.vector_store %arg10[%c2_144, %c0_145, %c0_146], %341 {strides = array<i32>} : memref<8x2x32xf32, #tpu.memory_space<vmem>>, vector<1x2x32xf32>,
    %c8_i32_147 = arith.constant 8 : i32
    %342 = arith.muli %arg0, %c8_i32_147 : i32
    %c6_i32 = arith.constant 6 : i32
    %343 = arith.addi %342, %c6_i32 : i32
    %cst_148 = arith.constant dense<0.000000e+00> : vector<2x64xf32>
    %344 = tpu.matmul %332, %4, %cst_148 {dimension_numbers = #tpu.dot_dimension_numbers<[1], [0], [0], [1], [0, 0, 1, 1], [], []>} : vector<2x64xf32>, vector<64x64xf32>, vector<2x64xf32> -> vector<2x64xf32>
    %cst_149 = arith.constant dense<0.000000e+00> : vector<2x64xf32>
    %345 = tpu.matmul %332, %5, %cst_149 {dimension_numbers = #tpu.dot_dimension_numbers<[1], [0], [0], [1], [0, 0, 1, 1], [], []>} : vector<2x64xf32>, vector<64x64xf32>, vector<2x64xf32> -> vector<2x64xf32>
    %cst_150 = arith.constant dense<0.000000e+00> : vector<2x64xf32>
    %346 = tpu.matmul %332, %6, %cst_150 {dimension_numbers = #tpu.dot_dimension_numbers<[1], [0], [0], [1], [0, 0, 1, 1], [], []>} : vector<2x64xf32>, vector<64x64xf32>, vector<2x64xf32> -> vector<2x64xf32>
    %347 = vector.broadcast %7 : vector<1x64xf32> to vector<2x64xf32>
    %348 = arith.addf %346, %347 : vector<2x64xf32>
    %c6_151 = arith.constant 6 : index
    %c0_152 = arith.constant 0 : index
    %c0_153 = arith.constant 0 : index
    %349 = vector.load %arg2[%c6_151, %c0_152, %c0_153] : memref<8x2x64xf32, #tpu.memory_space<vmem>>, vector<1x2x64xf32>
    %350 = vector.shape_cast %349 : vector<1x2x64xf32> to vector<2x64xf32>
    %351 = arith.addf %350, %344 : vector<2x64xf32>
    %352 = arith.negf %351 : vector<2x64xf32>
    %353 = math.exp %352 : vector<2x64xf32>
    %cst_154 = arith.constant 1.000000e+00 : f32
    %354 = vector.broadcast %cst_154 : f32 to vector<2x64xf32>
    %355 = arith.addf %354, %353 : vector<2x64xf32>
    %356 = arith.divf %354, %355 : vector<2x64xf32>
    %c6_155 = arith.constant 6 : index
    %c0_156 = arith.constant 0 : index
    %c0_157 = arith.constant 0 : index
    %357 = vector.load %arg3[%c6_155, %c0_156, %c0_157] : memref<8x2x64xf32, #tpu.memory_space<vmem>>, vector<1x2x64xf32>
    %358 = vector.shape_cast %357 : vector<1x2x64xf32> to vector<2x64xf32>
    %359 = arith.addf %358, %345 : vector<2x64xf32>
    %360 = arith.negf %359 : vector<2x64xf32>
    %361 = math.exp %360 : vector<2x64xf32>
    %cst_158 = arith.constant 1.000000e+00 : f32
    %362 = vector.broadcast %cst_158 : f32 to vector<2x64xf32>
    %363 = arith.addf %362, %361 : vector<2x64xf32>
    %364 = arith.divf %362, %363 : vector<2x64xf32>
    %c6_159 = arith.constant 6 : index
    %c0_160 = arith.constant 0 : index
    %c0_161 = arith.constant 0 : index
    %365 = vector.load %arg4[%c6_159, %c0_160, %c0_161] : memref<8x2x64xf32, #tpu.memory_space<vmem>>, vector<1x2x64xf32>
    %366 = vector.shape_cast %365 : vector<1x2x64xf32> to vector<2x64xf32>
    %367 = arith.mulf %356, %348 : vector<2x64xf32>
    %368 = arith.addf %366, %367 : vector<2x64xf32>
    %369 = math.tanh %368 : vector<2x64xf32>
    %cst_162 = arith.constant 1.000000e+00 : f32
    %370 = vector.broadcast %cst_162 : f32 to vector<2x64xf32>
    %371 = arith.subf %370, %364 : vector<2x64xf32>
    %372 = arith.mulf %371, %369 : vector<2x64xf32>
    %373 = arith.mulf %364, %332 : vector<2x64xf32>
    %374 = arith.addf %372, %373 : vector<2x64xf32>
    %c7_i32_163 = arith.constant 7 : i32
    %375 = arith.subi %c7_i32_163, %343 : i32
    %376 = vector.broadcast %343 : i32 to vector<2x64xi32>
    %377 = vector.broadcast %375 : i32 to vector<2x64xi32>
    %378 = arith.select %10, %376, %377 : vector<2x64xi1>, vector<2x64xi32>
    %379 = vector.broadcast %3 : vector<2x1xi32> to vector<2x64xi32>
    %380 = arith.cmpi slt, %378, %379 : vector<2x64xi32>
    %381 = arith.extui %380 : vector<2x64xi1> to vector<2x64xi32>
    %382 = arith.sitofp %381 : vector<2x64xi32> to vector<2x64xf32>
    %383 = arith.mulf %382, %374 : vector<2x64xf32>
    %cst_164 = arith.constant 1.000000e+00 : f32
    %384 = vector.broadcast %cst_164 : f32 to vector<2x64xf32>
    %385 = arith.subf %384, %382 : vector<2x64xf32>
    %386 = arith.mulf %385, %332 : vector<2x64xf32>
    %387 = arith.addf %383, %386 : vector<2x64xf32>
    %388 = arith.mulf %387, %382 : vector<2x64xf32>
    %389 = vector.extract_strided_slice %388 {offsets = [0, 0], sizes = [2, 32], strides = [1, 1]} : vector<2x64xf32> to vector<2x32xf32>
    %c6_165 = arith.constant 6 : index
    %c0_166 = arith.constant 0 : index
    %c0_167 = arith.constant 0 : index
    %390 = vector.load %arg9[%c6_165, %c0_166, %c0_167] : memref<8x2x32xf32, #tpu.memory_space<vmem>>, vector<1x2x32xf32>
    %391 = vector.shape_cast %390 : vector<1x2x32xf32> to vector<2x32xf32>
    %392 = vector.shape_cast %389 : vector<2x32xf32> to vector<1x2x32xf32>
    tpu.vector_store %arg9[%c6_165, %c0_166, %c0_167], %392 {strides = array<i32>} : memref<8x2x32xf32, #tpu.memory_space<vmem>>, vector<1x2x32xf32>,
    %393 = vector.extract_strided_slice %388 {offsets = [0, 32], sizes = [2, 32], strides = [1, 1]} : vector<2x64xf32> to vector<2x32xf32>
    %c1_168 = arith.constant 1 : index
    %c0_169 = arith.constant 0 : index
    %c0_170 = arith.constant 0 : index
    %394 = vector.load %arg10[%c1_168, %c0_169, %c0_170] : memref<8x2x32xf32, #tpu.memory_space<vmem>>, vector<1x2x32xf32>
    %395 = vector.shape_cast %394 : vector<1x2x32xf32> to vector<2x32xf32>
    %396 = vector.shape_cast %393 : vector<2x32xf32> to vector<1x2x32xf32>
    tpu.vector_store %arg10[%c1_168, %c0_169, %c0_170], %396 {strides = array<i32>} : memref<8x2x32xf32, #tpu.memory_space<vmem>>, vector<1x2x32xf32>,
    %c8_i32_171 = arith.constant 8 : i32
    %397 = arith.muli %arg0, %c8_i32_171 : i32
    %c7_i32_172 = arith.constant 7 : i32
    %398 = arith.addi %397, %c7_i32_172 : i32
    %cst_173 = arith.constant dense<0.000000e+00> : vector<2x64xf32>
    %399 = tpu.matmul %387, %4, %cst_173 {dimension_numbers = #tpu.dot_dimension_numbers<[1], [0], [0], [1], [0, 0, 1, 1], [], []>} : vector<2x64xf32>, vector<64x64xf32>, vector<2x64xf32> -> vector<2x64xf32>
    %cst_174 = arith.constant dense<0.000000e+00> : vector<2x64xf32>
    %400 = tpu.matmul %387, %5, %cst_174 {dimension_numbers = #tpu.dot_dimension_numbers<[1], [0], [0], [1], [0, 0, 1, 1], [], []>} : vector<2x64xf32>, vector<64x64xf32>, vector<2x64xf32> -> vector<2x64xf32>
    %cst_175 = arith.constant dense<0.000000e+00> : vector<2x64xf32>
    %401 = tpu.matmul %387, %6, %cst_175 {dimension_numbers = #tpu.dot_dimension_numbers<[1], [0], [0], [1], [0, 0, 1, 1], [], []>} : vector<2x64xf32>, vector<64x64xf32>, vector<2x64xf32> -> vector<2x64xf32>
    %402 = vector.broadcast %7 : vector<1x64xf32> to vector<2x64xf32>
    %403 = arith.addf %401, %402 : vector<2x64xf32>
    %c7_176 = arith.constant 7 : index
    %c0_177 = arith.constant 0 : index
    %c0_178 = arith.constant 0 : index
    %404 = vector.load %arg2[%c7_176, %c0_177, %c0_178] : memref<8x2x64xf32, #tpu.memory_space<vmem>>, vector<1x2x64xf32>
    %405 = vector.shape_cast %404 : vector<1x2x64xf32> to vector<2x64xf32>
    %406 = arith.addf %405, %399 : vector<2x64xf32>
    %407 = arith.negf %406 : vector<2x64xf32>
    %408 = math.exp %407 : vector<2x64xf32>
    %cst_179 = arith.constant 1.000000e+00 : f32
    %409 = vector.broadcast %cst_179 : f32 to vector<2x64xf32>
    %410 = arith.addf %409, %408 : vector<2x64xf32>
    %411 = arith.divf %409, %410 : vector<2x64xf32>
    %c7_180 = arith.constant 7 : index
    %c0_181 = arith.constant 0 : index
    %c0_182 = arith.constant 0 : index
    %412 = vector.load %arg3[%c7_180, %c0_181, %c0_182] : memref<8x2x64xf32, #tpu.memory_space<vmem>>, vector<1x2x64xf32>
    %413 = vector.shape_cast %412 : vector<1x2x64xf32> to vector<2x64xf32>
    %414 = arith.addf %413, %400 : vector<2x64xf32>
    %415 = arith.negf %414 : vector<2x64xf32>
    %416 = math.exp %415 : vector<2x64xf32>
    %cst_183 = arith.constant 1.000000e+00 : f32
    %417 = vector.broadcast %cst_183 : f32 to vector<2x64xf32>
    %418 = arith.addf %417, %416 : vector<2x64xf32>
    %419 = arith.divf %417, %418 : vector<2x64xf32>
    %c7_184 = arith.constant 7 : index
    %c0_185 = arith.constant 0 : index
    %c0_186 = arith.constant 0 : index
    %420 = vector.load %arg4[%c7_184, %c0_185, %c0_186] : memref<8x2x64xf32, #tpu.memory_space<vmem>>, vector<1x2x64xf32>
    %421 = vector.shape_cast %420 : vector<1x2x64xf32> to vector<2x64xf32>
    %422 = arith.mulf %411, %403 : vector<2x64xf32>
    %423 = arith.addf %421, %422 : vector<2x64xf32>
    %424 = math.tanh %423 : vector<2x64xf32>
    %cst_187 = arith.constant 1.000000e+00 : f32
    %425 = vector.broadcast %cst_187 : f32 to vector<2x64xf32>
    %426 = arith.subf %425, %419 : vector<2x64xf32>
    %427 = arith.mulf %426, %424 : vector<2x64xf32>
    %428 = arith.mulf %419, %387 : vector<2x64xf32>
    %429 = arith.addf %427, %428 : vector<2x64xf32>
    %c7_i32_188 = arith.constant 7 : i32
    %430 = arith.subi %c7_i32_188, %398 : i32
    %431 = vector.broadcast %398 : i32 to vector<2x64xi32>
    %432 = vector.broadcast %430 : i32 to vector<2x64xi32>
    %433 = arith.select %10, %431, %432 : vector<2x64xi1>, vector<2x64xi32>
    %434 = vector.broadcast %3 : vector<2x1xi32> to vector<2x64xi32>
    %435 = arith.cmpi slt, %433, %434 : vector<2x64xi32>
    %436 = arith.extui %435 : vector<2x64xi1> to vector<2x64xi32>
    %437 = arith.sitofp %436 : vector<2x64xi32> to vector<2x64xf32>
    %438 = arith.mulf %437, %429 : vector<2x64xf32>
    %cst_189 = arith.constant 1.000000e+00 : f32
    %439 = vector.broadcast %cst_189 : f32 to vector<2x64xf32>
    %440 = arith.subf %439, %437 : vector<2x64xf32>
    %441 = arith.mulf %440, %387 : vector<2x64xf32>
    %442 = arith.addf %438, %441 : vector<2x64xf32>
    %443 = arith.mulf %442, %437 : vector<2x64xf32>
    %444 = vector.extract_strided_slice %443 {offsets = [0, 0], sizes = [2, 32], strides = [1, 1]} : vector<2x64xf32> to vector<2x32xf32>
    %c7_190 = arith.constant 7 : index
    %c0_191 = arith.constant 0 : index
    %c0_192 = arith.constant 0 : index
    %445 = vector.load %arg9[%c7_190, %c0_191, %c0_192] : memref<8x2x32xf32, #tpu.memory_space<vmem>>, vector<1x2x32xf32>
    %446 = vector.shape_cast %445 : vector<1x2x32xf32> to vector<2x32xf32>
    %447 = vector.shape_cast %444 : vector<2x32xf32> to vector<1x2x32xf32>
    tpu.vector_store %arg9[%c7_190, %c0_191, %c0_192], %447 {strides = array<i32>} : memref<8x2x32xf32, #tpu.memory_space<vmem>>, vector<1x2x32xf32>,
    %448 = vector.extract_strided_slice %443 {offsets = [0, 32], sizes = [2, 32], strides = [1, 1]} : vector<2x64xf32> to vector<2x32xf32>
    %c0_193 = arith.constant 0 : index
    %c0_194 = arith.constant 0 : index
    %c0_195 = arith.constant 0 : index
    %449 = vector.load %arg10[%c0_193, %c0_194, %c0_195] : memref<8x2x32xf32, #tpu.memory_space<vmem>>, vector<1x2x32xf32>
    %450 = vector.shape_cast %449 : vector<1x2x32xf32> to vector<2x32xf32>
    %451 = vector.shape_cast %448 : vector<2x32xf32> to vector<1x2x32xf32>
    tpu.vector_store %arg10[%c0_193, %c0_194, %c0_195], %451 {strides = array<i32>} : memref<8x2x32xf32, #tpu.memory_space<vmem>>, vector<1x2x32xf32>,
    %c0_196 = arith.constant 0 : index
    %c0_197 = arith.constant 0 : index
    %452 = vector.load %arg12[%c0_196, %c0_197] : memref<2x64xf32, #tpu.memory_space<vmem>>, vector<2x64xf32>
    tpu.vector_store %arg12[%c0_196, %c0_197], %442 {strides = array<i32>} : memref<2x64xf32, #tpu.memory_space<vmem>>, vector<2x64xf32>,
    %c0_i32_198 = arith.constant 0 : i32
    %453 = arith.cmpi eq, %arg0, %c0_i32_198 : i32
    %454 = arith.extui %453 : i1 to i32
    %c0_i32_199 = arith.constant 0 : i32
    %455 = arith.cmpi ne, %454, %c0_i32_199 : i32
    scf.if %455 {
      %c0_200 = arith.constant 0 : index
      %c0_201 = arith.constant 0 : index
      %456 = vector.load %arg11[%c0_200, %c0_201] : memref<2x64xf32, #tpu.memory_space<vmem>>, vector<2x64xf32>
      tpu.vector_store %arg11[%c0_200, %c0_201], %442 {strides = array<i32>} : memref<2x64xf32, #tpu.memory_space<vmem>>, vector<2x64xf32>,
    } else {
    }
    return
  }
  func.func @transform_0(%arg0: i32) -> (i32, i32) {
    %c0_i32 = arith.constant 0 : i32
    %c0_i32_0 = arith.constant 0 : i32
    %c0_i32_1 = arith.constant 0 : i32
    return %c0_i32, %c0_i32_0 : i32, i32
  }
  func.func @transform_1(%arg0: i32) -> (i32, i32, i32) {
    %c0_i32 = arith.constant 0 : i32
    %c0_i32_0 = arith.constant 0 : i32
    %c0_i32_1 = arith.constant 0 : i32
    return %arg0, %c0_i32, %c0_i32_0 : i32, i32, i32
  }
  func.func @transform_2(%arg0: i32) -> (i32, i32, i32) {
    %c0_i32 = arith.constant 0 : i32
    %c0_i32_0 = arith.constant 0 : i32
    %c0_i32_1 = arith.constant 0 : i32
    return %arg0, %c0_i32, %c0_i32_0 : i32, i32, i32
  }
  func.func @transform_3(%arg0: i32) -> (i32, i32, i32) {
    %c0_i32 = arith.constant 0 : i32
    %c0_i32_0 = arith.constant 0 : i32
    %c0_i32_1 = arith.constant 0 : i32
    return %arg0, %c0_i32, %c0_i32_0 : i32, i32, i32
  }
  func.func @transform_4(%arg0: i32) -> (i32, i32) {
    %c0_i32 = arith.constant 0 : i32
    %c0_i32_0 = arith.constant 0 : i32
    %c0_i32_1 = arith.constant 0 : i32
    return %c0_i32, %c0_i32_0 : i32, i32
  }
  func.func @transform_5(%arg0: i32) -> (i32, i32) {
    %c0_i32 = arith.constant 0 : i32
    %c0_i32_0 = arith.constant 0 : i32
    %c0_i32_1 = arith.constant 0 : i32
    return %c0_i32, %c0_i32_0 : i32, i32
  }
  func.func @transform_6(%arg0: i32) -> (i32, i32) {
    %c0_i32 = arith.constant 0 : i32
    %c0_i32_0 = arith.constant 0 : i32
    %c0_i32_1 = arith.constant 0 : i32
    return %c0_i32, %c0_i32_0 : i32, i32
  }
  func.func @transform_7(%arg0: i32) -> (i32, i32) {
    %c0_i32 = arith.constant 0 : i32
    %c0_i32_0 = arith.constant 0 : i32
    %c0_i32_1 = arith.constant 0 : i32
    return %c0_i32, %c0_i32_0 : i32, i32
  }
  func.func @transform_8(%arg0: i32) -> (i32, i32, i32) {
    %c0_i32 = arith.constant 0 : i32
    %c0_i32_0 = arith.constant 0 : i32
    %c0_i32_1 = arith.constant 0 : i32
    return %arg0, %c0_i32, %c0_i32_0 : i32, i32, i32
  }
  func.func @transform_9(%arg0: i32) -> (i32, i32, i32) {
    %c0_i32 = arith.constant 0 : i32
    %0 = arith.subi %c0_i32, %arg0 : i32
    %c0_i32_0 = arith.constant 0 : i32
    %c0_i32_1 = arith.constant 0 : i32
    %c0_i32_2 = arith.constant 0 : i32
    return %0, %c0_i32_0, %c0_i32_1 : i32, i32, i32
  }
  func.func @transform_10(%arg0: i32) -> (i32, i32) {
    %c0_i32 = arith.constant 0 : i32
    %c0_i32_0 = arith.constant 0 : i32
    %c0_i32_1 = arith.constant 0 : i32
    return %c0_i32, %c0_i32_0 : i32, i32
  }
}

</mosaic_0001>

<bundles_post_ra>
// kernel: tpu_custom_call.1
= control target key start
LH: loop header
LB: loop body
LE: loop exit
PB: predicated region body
PF: predicated region fallthrough
CT: control target
= control target key end

     0   :  { %16 = vsyncpa [#allocation4], 0  ;;  %s4296_s0 = inlined_call_operand.vmem [shape: s32[2,1], index: 0, kind: input, shape index: {}]   ;;  %s4297_s1 = inlined_call_operand.hbm [shape: f32[8,2,64], index: 1, kind: input, shape index: {}]   ;;  %s4298_s2 = inlined_call_operand.hbm [shape: f32[8,2,64], index: 2, kind: input, shape index: {}]   ;;  %s4299_s3 = inlined_call_operand.hbm [shape: f32[8,2,64], index: 3, kind: input, shape index: {}]   ;;  %s4300_s4 = inlined_call_operand.hbm [shape: f32[64,64], index: 4, kind: input, shape index: {}]   ;;  %s4301_s5 = inlined_call_operand.hbm [shape: f32[64,64], index: 5, kind: input, shape index: {}]   ;;  %s4302_s6 = inlined_call_operand.hbm [shape: f32[64,64], index: 6, kind: input, shape index: {}]   ;;  %s4303_s7 = inlined_call_operand.vmem [shape: f32[1,64], index: 7, kind: input, shape index: {}]   ;;  %s4304_s8 = inlined_call_operand.hbm [shape: f32[8,2,32], index: 8, kind: output, shape index: {0}]   ;;  %s4305_s9 = inlined_call_operand.hbm [shape: f32[8,2,32], index: 9, kind: output, shape index: {1}]   ;;  %s4306_s10 = inlined_call_operand.hbm [shape: f32[2,64], index: 10, kind: output, shape index: {2}]  }
   0x1   :  { %17 = vsyncpa [#allocation7], 0 }
   0x2   :  { %18 = vsyncpa [#allocation10], 0 }
   0x3   :  { %19 = vsyncpa [#allocation13], 0 }
   0x4   :  { %20 = vsyncpa [#allocation5], 0 }
   0x5   :  { %21 = vsyncpa [#allocation16], 0  ;;  %s3635_s13 = smov [#allocation6]   ;;  %s3636_s15 = smov [#allocation9]  }
   0x6   :  { %s41_s14 = sshll.u32 %s3635_s13, 4  ;;  %s65_s16 = sshll.u32 %s3636_s15, 4  ;;  %s42_s14 = int_to_ptr.vmem [resolvable:$true] %s41_s14  ;;  %s3715_s16 = int_to_ptr.vmem [resolvable:$true] %s65_s16 }
   0x7   :  { %s3425_s19 = scalar_lea.hbm %s4298_s2, 256 }
   0x8   :  { %p3426_p0 = scmp.ne.s32.totalorder %s4298_s2, %s3425_s19  ;;  %p3429_p1 = scmp.lt.u32.totalorder %s3425_s19, %s4298_s2 }
   0xa   :  { %p3431_p2 = pnand %p3429_p1, %p3426_p0 }
   0xc   :  { %3434 = shalt.err (!%p3431_p2)
}
   0xd   :  { %s3435_s24 = scalar_lea.vmem %s42_s14, 256  ;;  %p3440_p4 = scmp.lt.s32.totalorder %s42_s14, %s42_s14 }
   0xe   :  { %p3436_p3 = scmp.ne.s32.totalorder %s42_s14, %s3435_s24  ;;  %p3441_p5 = scmp.lt.s32.totalorder %s3435_s24, %s3435_s24 }
  0x10   :  { %p3442_p6 = por %p3441_p5, %p3440_p4 }
  0x12   :  { %p3443_p7 = pnand %p3442_p6, %p3436_p3 }
  0x14   :  { %3446 = shalt.err (!%p3443_p7)
}
  0x15   :  { %s3637_s25 = smov 32   ;;  %s3638_s26 = smov 2  }
  0x16   :  { %47 = dma.hbm_to_vmem [thread:$0]  %s4298_s2, 256, %s42_s14, [#allocation7], %s3637_s25, %s3637_s25, %s3638_s26  }
  0x17   :  { %s3447_s11 = scalar_lea.hbm %s4300_s4, 1024 }
  0x18   :  { %p3448_p8 = scmp.ne.s32.totalorder %s4300_s4, %s3447_s11  ;;  %p3451_p9 = scmp.lt.u32.totalorder %s3447_s11, %s4300_s4 }
  0x1a   :  { %p3453_p10 = pnand %p3451_p9, %p3448_p8 }
  0x1c   :  { %3456 = shalt.err (!%p3453_p10)
}
  0x1d   :  { %s3457_s18 = scalar_lea.vmem %s3715_s16, 1024  ;;  %p3462_p12 = scmp.lt.s32.totalorder %s3715_s16, %s3715_s16 }
  0x1e   :  { %p3458_p11 = scmp.ne.s32.totalorder %s3715_s16, %s3457_s18  ;;  %p3463_p13 = scmp.lt.s32.totalorder %s3457_s18, %s3457_s18 }
  0x20   :  { %p3464_p0 = por %p3463_p13, %p3462_p12 }
  0x22   :  { %p3465_p1 = pnand %p3464_p0, %p3458_p11 }
  0x24   :  { %3468 = shalt.err (!%p3465_p1)
}
  0x25   :  { %s3639_s2 = smov 128   ;;  %s3640_s14 = smov 8  }
  0x26   :  { %71 = dma.hbm_to_vmem [thread:$0]  %s4300_s4, 1024, %s3715_s16, [#allocation10], %s3639_s2, %s3639_s2, %s3640_s14  }
  0x27   :  { %s3641_s21 = smov [#allocation3]   ;;  %s3642_s23 = smov [#allocation8]  }
  0x28   :  { %s29_s22 = sshll.u32 %s3641_s21, 4  ;;  %s53_s24 = sshll.u32 %s3642_s23, 4  ;;  %s30_s22 = int_to_ptr.vmem [resolvable:$true] %s29_s22  ;;  %s3752_s24 = int_to_ptr.vmem [resolvable:$true] %s53_s24 }
  0x29   :  { %s3469_s29 = scalar_lea.hbm %s4297_s1, 256 }
  0x2a   :  { %p3470_p2 = scmp.ne.s32.totalorder %s4297_s1, %s3469_s29  ;;  %p3473_p3 = scmp.lt.u32.totalorder %s3469_s29, %s4297_s1 }
  0x2c   :  { %p3475_p4 = pnand %p3473_p3, %p3470_p2 }
  0x2e   :  { %3478 = shalt.err (!%p3475_p4)
}
  0x2f   :  { %s3479_s4 = scalar_lea.vmem %s30_s22, 256  ;;  %p3484_p6 = scmp.lt.s32.totalorder %s30_s22, %s30_s22 }
  0x30   :  { %p3480_p5 = scmp.ne.s32.totalorder %s30_s22, %s3479_s4  ;;  %p3485_p7 = scmp.lt.s32.totalorder %s3479_s4, %s3479_s4 }
  0x32   :  { %p3486_p8 = por %p3485_p7, %p3484_p6 }
  0x34   :  { %p3487_p9 = pnand %p3486_p8, %p3480_p5 }
  0x36   :  { %3490 = shalt.err (!%p3487_p9)
}
  0x37   :  { %35 = dma.hbm_to_vmem [thread:$0]  %s4297_s1, 256, %s30_s22, [#allocation4], %s3637_s25, %s3637_s25, %s3638_s26  }
  0x38   :  { %s3491_s19 = scalar_lea.hbm %s4299_s3, 256 }
  0x39   :  { %p3492_p10 = scmp.ne.s32.totalorder %s4299_s3, %s3491_s19  ;;  %p3495_p11 = scmp.lt.u32.totalorder %s3491_s19, %s4299_s3 }
  0x3b   :  { %p3497_p12 = pnand %p3495_p11, %p3492_p10 }
  0x3d   :  { %3500 = shalt.err (!%p3497_p12)
}
  0x3e   :  { %s3501_s28 = scalar_lea.vmem %s3752_s24, 256  ;;  %p3506_p0 = scmp.lt.s32.totalorder %s3752_s24, %s3752_s24 }
  0x3f   :  { %p3502_p13 = scmp.ne.s32.totalorder %s3752_s24, %s3501_s28  ;;  %p3507_p1 = scmp.lt.s32.totalorder %s3501_s28, %s3501_s28 }
  0x41   :  { %p3508_p2 = por %p3507_p1, %p3506_p0 }
  0x43   :  { %p3509_p3 = pnand %p3508_p2, %p3502_p13 }
  0x45   :  { %3512 = shalt.err (!%p3509_p3)
}
  0x46   :  { %59 = dma.hbm_to_vmem [thread:$0]  %s4299_s3, 256, %s3752_s24, [#allocation7], %s3637_s25, %s3637_s25, %s3638_s26  }
  0x47   :  { %s3643_s29 = smov [#allocation11]   ;;  %s3644_s11 = smov [#allocation12]  }
  0x48   :  { %s77_s30 = sshll.u32 %s3643_s29, 4  ;;  %s89_s12 = sshll.u32 %s3644_s11, 4  ;;  %s78_s30 = int_to_ptr.vmem [resolvable:$true] %s77_s30  ;;  %s3789_s12 = int_to_ptr.vmem [resolvable:$true] %s89_s12 }
  0x49   :  { %s3513_s16 = scalar_lea.hbm %s4301_s5, 1024 }
  0x4a   :  { %p3514_p4 = scmp.ne.s32.totalorder %s4301_s5, %s3513_s16  ;;  %p3517_p5 = scmp.lt.u32.totalorder %s3513_s16, %s4301_s5 }
  0x4c   :  { %p3519_p6 = pnand %p3517_p5, %p3514_p4 }
  0x4e   :  { %3522 = shalt.err (!%p3519_p6)
}
  0x4f   :  { %s3523_s3 = scalar_lea.vmem %s78_s30, 1024  ;;  %p3528_p8 = scmp.lt.s32.totalorder %s78_s30, %s78_s30 }
  0x50   :  { %p3524_p7 = scmp.ne.s32.totalorder %s78_s30, %s3523_s3  ;;  %p3529_p9 = scmp.lt.s32.totalorder %s3523_s3, %s3523_s3 }
  0x52   :  { %p3530_p10 = por %p3529_p9, %p3528_p8 }
  0x54   :  { %p3531_p11 = pnand %p3530_p10, %p3524_p7 }
  0x56   :  { %3534 = shalt.err (!%p3531_p11)
}
  0x57   :  { %83 = dma.hbm_to_vmem [thread:$0]  %s4301_s5, 1024, %s78_s30, [#allocation10], %s3639_s2, %s3639_s2, %s3640_s14  }
  0x58   :  { %s3535_s27 = scalar_lea.hbm %s4302_s6, 1024 }
  0x59   :  { %p3536_p12 = scmp.ne.s32.totalorder %s4302_s6, %s3535_s27  ;;  %p3539_p13 = scmp.lt.u32.totalorder %s3535_s27, %s4302_s6 }
  0x5b   :  { %p3541_p0 = pnand %p3539_p13, %p3536_p12 }
  0x5d   :  { %3544 = shalt.err (!%p3541_p0)
}
  0x5e   :  { %s3545_s11 = scalar_lea.vmem %s3789_s12, 1024  ;;  %p3550_p2 = scmp.lt.s32.totalorder %s3789_s12, %s3789_s12 }
  0x5f   :  { %p3546_p1 = scmp.ne.s32.totalorder %s3789_s12, %s3545_s11  ;;  %p3551_p3 = scmp.lt.s32.totalorder %s3545_s11, %s3545_s11 }
  0x61   :  { %p3552_p4 = por %p3551_p3, %p3550_p2 }
  0x63   :  { %p3553_p5 = pnand %p3552_p4, %p3546_p1 }
  0x65   :  { %3556 = shalt.err (!%p3553_p5)
}
  0x66   :  { %95 = dma.hbm_to_vmem [thread:$0]  %s4302_s6, 1024, %s3789_s12, [#allocation13], %s3639_s2, %s3639_s2, %s3640_s14  }
  0x67   :  { %3623 = dma.done.wait [#allocation4], 256  }
  0x68   :  { %3624 = vsyncadd [#allocation4], 4294967040 }
  0x69   :  { %3625 = dma.done.wait [#allocation7], 512  }
  0x6a   :  { %3626 = vsyncadd [#allocation7], 4294966784 }
  0x6b   :  { %3627 = dma.done.wait [#allocation10], 2048  }
  0x6c   :  { %3628 = vsyncadd [#allocation10], 4294965248 }
  0x6d   :  { %3629 = dma.done.wait [#allocation13], 1024  }
  0x6e   :  { %3630 = vsyncadd [#allocation13], 4294966272  ;;  %vm122_vm0 = vcmask 517120   ;;  %v3645_v0 = vmov 0.0|0.0   ;;  %v3646_v1 = vmov 0.0   ;;  %vm3647_vm1 = vmmov 0  }
  0x6f   :  { %3030 = vmatprep.subr.bf16.mxu0 %v3645_v0  ;;  %3042 = vmatprep.subr.bf16.mxu1 %v3645_v0  ;;  %123 = vst.msk [vmem:[#allocation2] sm:$0x3] %vm122_vm0, %v3646_v1  ;;  %v3648_v2 = vmov 0   ;;  %v125_v3 = vld [vmem:[#allocation9] sm:$0xff]  ;;  %v126_v4 = vld [vmem:[#allocation9 + $0x8] sm:$0xff]  ;;  %v127_v5 = vld [vmem:[#allocation9 + $0x10] sm:$0xff]  ;;  %v150_v56 = vlaneseq }
  0x70   :  { %2590 = vmatprep.mubr.msk.f32.mxu0 %vm3647_vm1, %v3646_v1  ;;  %2609 = vmatprep.mubr.msk.f32.mxu1 %vm3647_vm1, %v3646_v1  ;;  %v3835_v6 = vpack.c.bf16 %v126_v4, %v125_v3  ;;  %v128_v7 = vld [vmem:[#allocation9 + $0x18] sm:$0xff]  ;;  %v133_v8 = vld [vmem:[#allocation11] sm:$0xff]  ;;  %v134_v10 = vld [vmem:[#allocation11 + $0x8] sm:$0xff]  ;;  %vm155_vm2 = vcmask 523264   ;;  %v3649_v4 = vmov 7   ;;  %vm414_vm5 = vcmask 254976  }
  0x71   :  { %3343 = vset.pattern.permute.xlu0 %v3648_v2  ;;  %v3838_v9 = vpack.c.bf16 %v128_v7, %v127_v5  ;;  %v135_v11 = vld [vmem:[#allocation11 + $0x10] sm:$0xff]  ;;  %v129_v12 = vld [vmem:[#allocation9 + $0x20] sm:$0xff]  ;;  %v130_v13 = vld [vmem:[#allocation9 + $0x28] sm:$0xff]  ;;  %v3841_v14 = vpack.c.bf16 %v134_v10, %v133_v8  ;;  %v3922_v60 = vand.u32 127, %v150_v56  ;;  %s3650_s12 = smov 96  }
  0x72   :  { %3032 = vmatpush3.bf16.msra.mxu0 %v3835_v6  ;;  %v136_v15 = vld [vmem:[#allocation11 + $0x18] sm:$0xff]  ;;  %v3847_v17 = vpack.c.bf16 %v130_v13, %v129_v12  ;;  %v137_v18 = vld [vmem:[#allocation11 + $0x20] sm:$0xff]  ;;  %v138_v19 = vld [vmem:[#allocation11 + $0x28] sm:$0xff] }
  0x73   :  { %3033 = vmatprep.subr.bf16.mxu0 %v3645_v0  ;;  %3044 = vmatpush3.bf16.msra.mxu1 %v3841_v14  ;;  %v3844_v16 = vpack.c.bf16 %v136_v15, %v135_v11  ;;  %v131_v20 = vld [vmem:[#allocation9 + $0x30] sm:$0xff]  ;;  %v132_v21 = vld [vmem:[#allocation9 + $0x38] sm:$0xff]  ;;  %v124_v22 = vld [vmem:[%s4296_s0] sm:$0x3]  ;;  %v3855_v23 = vpack.c.bf16 %v138_v19, %v137_v18  ;;  %vm152_vm3 = vcmp.lt.s32.totalorder %v3922_v60, 32 }
  0x74   :  { %3045 = vmatprep.subr.bf16.mxu1 %v3645_v0  ;;  %404 = vperm.xlu0 %3343, %v124_v22   ;;  %v3858_v24 = vpack.c.bf16 %v132_v21, %v131_v20  ;;  %v139_v25 = vld [vmem:[#allocation11 + $0x30] sm:$0xff]  ;;  %v140_v26 = vld [vmem:[#allocation11 + $0x38] sm:$0xff]  ;;  %v141_v27 = vld [vmem:[#allocation12] sm:$0xff]  ;;  %v402_v5 = vsel %vm152_vm3, 0, %v3649_v4 }
  0x75   :  { %v142_v28 = vld [vmem:[#allocation12 + $0x8] sm:$0xff]  ;;  %v3863_v29 = vpack.c.bf16 %v140_v26, %v139_v25  ;;  %v143_v32 = vld [vmem:[#allocation12 + $0x10] sm:$0xff]  ;;  %v144_v33 = vld [vmem:[#allocation12 + $0x18] sm:$0xff] }
  0x76   :  { %3035 = vmatpush3.bf16.msra.mxu0 %v3838_v9  ;;  %v3866_v30 = vld [vmem:[#allocation2] sm:$0x3]  ;;  %v3869_v31 = vpack.c.bf16 %v142_v28, %v141_v27  ;;  %v3876_v34 = vpack.c.bf16 %v144_v33, %v143_v32  ;;  %v145_v35 = vld [vmem:[#allocation12 + $0x20] sm:$0xff]  ;;  %v147_v38 = vld [vmem:[#allocation12 + $0x30] sm:$0xff] }
  0x77   :  { %3036 = vmatprep.subr.bf16.mxu0 %v3645_v0  ;;  %3047 = vmatpush3.bf16.msra.mxu1 %v3844_v16  ;;  %v146_v36 = vld [vmem:[#allocation12 + $0x28] sm:$0xff]  ;;  %v148_v39 = vld [vmem:[#allocation12 + $0x38] sm:$0xff]  ;;  %v375_v41 = vld [vmem:[#allocation3] sm:$0x3] }
  0x78   :  { %3048 = vmatprep.subr.bf16.mxu1 %v3645_v0  ;;  %v3888_v37 = vpack.c.bf16 %v146_v36, %v145_v35  ;;  %v3894_v40 = vpack.c.bf16 %v148_v39, %v147_v38  ;;  %v383_v45 = vld [vmem:[#allocation6] sm:$0x3]  ;;  %v3919_v57 = vld [vmem:[%s4303_s7] ss:$0 sm:$0xff]  ;;  %v391_v62 = vld [vmem:[#allocation8] sm:$0x3] }
  0x79   :  { %v637_v27 = vld [vmem:[#allocation3 + $0x2] sm:$0x3]  ;;  %v646_v33 = vld [vmem:[#allocation6 + $0x2] sm:$0x3] }
  0x7a   :  { %3038 = vmatpush3.bf16.msra.mxu0 %v3847_v17 }
  0x7b   :  { %3039 = vmatprep.subr.bf16.mxu0 %v3645_v0  ;;  %3050 = vmatpush3.bf16.msra.mxu1 %v3855_v23 }
  0x7c   :  { %3051 = vmatprep.subr.bf16.mxu1 %v3645_v0 }
  0x7e   :  { %3041 = vmatpush3.bf16.msra.mxu0 %v3858_v24 }
  0x7f   :  { %3054 = vmatprep.subr.bf16.mxu0 %v3645_v0  ;;  %3053 = vmatpush3.bf16.msra.mxu1 %v3863_v29 }
  0x80   :  { %3066 = vmatprep.subr.bf16.mxu1 %v3645_v0 }
  0x81   :  { %2591 = vmatmul.mubr.msk.f32.vlgmr.msra.gmra.mrb[0].mxu0 %vm155_vm2, %v3866_v30 }
  0x82   :  { %3056 = vmatpush3.bf16.msra.mxu0 %v3869_v31  ;;  %2628 = vmatprep.mubr.msk.f32.mxu0 %vm3647_vm1, %v3646_v1 }
  0x83   :  { %3057 = vmatprep.subr.bf16.mxu0 %v3645_v0  ;;  %2610 = vmatmul.mubr.msk.f32.vlgmr.msra.gmra.mrb[0].mxu1 %vm155_vm2, %v3866_v30 }
  0x84   :  { %3068 = vmatpush3.bf16.msra.mxu1 %v3835_v6  ;;  %2647 = vmatprep.mubr.msk.f32.mxu1 %vm3647_vm1, %v3646_v1 }
  0x85   :  { %3069 = vmatprep.subr.bf16.mxu1 %v3645_v0 }
  0x86   :  { %3059 = vmatpush3.bf16.msra.mxu0 %v3876_v34 }
  0x87   :  { %3060 = vmatprep.subr.bf16.mxu0 %v3645_v0 }
  0x88   :  { %3071 = vmatpush3.bf16.msra.mxu1 %v3838_v9 }
  0x89   :  { %3072 = vmatprep.subr.bf16.mxu1 %v3645_v0 }
  0x8a   :  { %3062 = vmatpush3.bf16.msra.mxu0 %v3888_v37 }
  0x8b   :  { %3063 = vmatprep.subr.bf16.mxu0 %v3645_v0 }
  0x8c   :  { %3074 = vmatpush3.bf16.msra.mxu1 %v3847_v17 }
  0x8d   :  { %3075 = vmatprep.subr.bf16.mxu1 %v3645_v0 }
  0x8e   :  { %3065 = vmatpush3.bf16.msra.mxu0 %v3894_v40 }
  0x8f   :  { %3078 = vmatprep.subr.bf16.mxu0 %v3645_v0 }
  0x90   :  { %3077 = vmatpush3.bf16.msra.mxu1 %v3858_v24 }
  0x91   :  { %2629 = vmatmul.mubr.msk.f32.vlgmr.msra.gmra.mrb[2].mxu0 %vm155_vm2, %v3866_v30  ;;  %3090 = vmatprep.subr.bf16.mxu1 %v3645_v0 }
  0x92   :  { %3080 = vmatpush3.bf16.msra.mxu0 %v3841_v14  ;;  %2666 = vmatprep.mubr.msk.f32.mxu0 %vm3647_vm1, %v3646_v1 }
  0x93   :  { %3081 = vmatprep.subr.bf16.mxu0 %v3645_v0 }
  0x96   :  { %3083 = vmatpush3.bf16.msra.mxu0 %v3844_v16 }
  0x97   :  { %3084 = vmatprep.subr.bf16.mxu0 %v3645_v0 }
  0x9a   :  { %3086 = vmatpush3.bf16.msra.mxu0 %v3855_v23 }
  0x9b   :  { %3087 = vmatprep.subr.bf16.mxu0 %v3645_v0 }
  0x9e   :  { %3089 = vmatpush3.bf16.msra.mxu0 %v3863_v29 }
  0x9f   :  { %3102 = vmatprep.subr.bf16.mxu0 %v3645_v0 }
  0xf3   :  { %v3927_v7 = vpop.permute.xlu0 %404 }
  0xf4   :  { %vm406_vm4 = vcmp.lt.s32.totalorder %v402_v5, %v3927_v7 }
  0xf5   :  { %v2315_v10 = vsel %vm406_vm4, 1.0, %v3646_v1 }
  0xf6   :  { %v410_v12 = vsub.f32 1.0, %v2315_v10 }
  0xf8   :  { %v411_v20 = vmul.f32 %v410_v12, %v3866_v30  ;;  %v898_v12 = vld [vmem:[#allocation3 + $0x4] sm:$0x3] }
 0x154   :  { %v225_v42 = vpop.f32.mrb[0].mxu0 }
 0x155   :  { %v376_v43 = vadd.f32 %v375_v41, %v225_v42  ;;  %v2592_v44 = vpop.f32.mrb[1].mxu0 }
 0x156   :  { %v295_v47 = vpop.f32.mrb[0].mxu1 }
 0x157   :  { %v2313_v46 = vmul.f32 -1.442695, %v376_v43  ;;  %v384_v48 = vadd.f32 %v383_v45, %v295_v47  ;;  %v2611_v49 = vpop.f32.mrb[1].mxu1 }
 0x159   :  { %3344 = vpow2.f32 %v2313_v46  ;;  %v2314_v50 = vmul.f32 -1.442695, %v384_v48 }
 0x15b   :  { %3346 = vpow2.f32 %v2314_v50  ;;  %v655_v50 = vld [vmem:[#allocation8 + $0x2] sm:$0x3] }
 0x163   :  { %v3345_v51 = vpop.eup %3344 }
 0x164   :  { %v380_v52 = vadd.f32 1.0, %v3345_v51  ;;  %v371_v53 = vpop.f32.mrb[2].mxu0 }
 0x165   :  { %v2630_v54 = vpop.f32.mrb[3].mxu0  ;;  %v3347_v55 = vpop.eup %3346  ;;  %v372_v59 = vadd.f32 %v3919_v57, %v371_v53  ;;  %v3651_v53 = vmov 6  }
 0x166   :  { %3348 = vrcp.f32 %v380_v52  ;;  %v388_v58 = vadd.f32 1.0, %v3347_v55  ;;  %v666_v54 = vsel %vm152_vm3, 1, %v3651_v53 }
 0x167   :  { %vm667_vm6 = vcmp.lt.s32.totalorder %v666_v54, %v3927_v7 }
 0x168   :  { %3350 = vrcp.f32 %v388_v58 }
 0x170   :  { %v3349_v61 = vpop.eup %3348 }
 0x171   :  { %v392_v63 = vmul.f32 %v3349_v61, %v372_v59  ;;  %v2321_v59 = vsel %vm667_vm6, 1.0, %v3646_v1 }
 0x172   :  { %v3351_v8 = vpop.eup %3350 }
 0x173   :  { %v393_v3 = vadd.f32 %v392_v63, %v391_v62  ;;  %v395_v11 = vsub.f32 1.0, %v3351_v8  ;;  %v397_v15 = vmul.f32 %v3351_v8, %v3866_v30 }
 0x175   :  { %3352 = vtanh.f32 %v393_v3  ;;  %v671_v3 = vsub.f32 1.0, %v2321_v59 }
 0x17f   :  { %v3353_v13 = vpop.eup %3352 }
 0x180   :  { %v396_v18 = vmul.f32 %v3353_v13, %v395_v11 }
 0x182   :  { %v398_v19 = vadd.f32 %v397_v15, %v396_v18 }
 0x184   :  { %v409_v21 = vmul.f32 %v2315_v10, %v398_v19  ;;  %v907_v19 = vld [vmem:[#allocation6 + $0x4] sm:$0x3] }
 0x186   :  { %v3933_v22 = vadd.f32 %v411_v20, %v409_v21 }
 0x188   :  { %2648 = vmatmul.mubr.msk.f32.vlgmr.msra.gmra.mrb[2].mxu1 %vm155_vm2, %v3933_v22  ;;  %2667 = vmatmul.mubr.msk.f32.vlgmr.msra.gmra.mrb[4].mxu0 %vm155_vm2, %v3933_v22  ;;  %v413_v25 = vmul.f32 %v2315_v10, %v3933_v22  ;;  %v672_v5 = vmul.f32 %v671_v3, %v3933_v22  ;;  %v1168_v3 = vld [vmem:[#allocation6 + $0x6] sm:$0x3] }
 0x189   :  { %3092 = vmatpush3.bf16.msra.mxu1 %v3869_v31  ;;  %2685 = vmatprep.mubr.msk.f32.mxu1 %vm3647_vm1, %v3646_v1 }
 0x18a   :  { %417 = vrot.lane.b32.xlu0 %v413_v25, %s3650_s12  ;;  %415 = vst.msk [vmem:[#allocation14] sm:$0x3] %vm414_vm5, %v413_v25  ;;  %3093 = vmatprep.subr.bf16.mxu1 %v3645_v0 }
 0x18b   :  { %3104 = vmatpush3.bf16.msra.mxu0 %v3835_v6  ;;  %2704 = vmatprep.mubr.msk.f32.mxu0 %vm3647_vm1, %v3646_v1 }
 0x18c   :  { %3105 = vmatprep.subr.bf16.mxu0 %v3645_v0 }
 0x18d   :  { %3095 = vmatpush3.bf16.msra.mxu1 %v3876_v34 }
 0x18e   :  { %3096 = vmatprep.subr.bf16.mxu1 %v3645_v0 }
 0x18f   :  { %3107 = vmatpush3.bf16.msra.mxu0 %v3838_v9 }
 0x190   :  { %3108 = vmatprep.subr.bf16.mxu0 %v3645_v0 }
 0x191   :  { %3098 = vmatpush3.bf16.msra.mxu1 %v3888_v37 }
 0x192   :  { %3099 = vmatprep.subr.bf16.mxu1 %v3645_v0 }
 0x193   :  { %3110 = vmatpush3.bf16.msra.mxu0 %v3847_v17 }
 0x194   :  { %3111 = vmatprep.subr.bf16.mxu0 %v3645_v0 }
 0x195   :  { %3101 = vmatpush3.bf16.msra.mxu1 %v3894_v40 }
 0x196   :  { %3114 = vmatprep.subr.bf16.mxu1 %v3645_v0 }
 0x197   :  { %3113 = vmatpush3.bf16.msra.mxu0 %v3858_v24 }
 0x198   :  { %2686 = vmatmul.mubr.msk.f32.vlgmr.msra.gmra.mrb[4].mxu1 %vm155_vm2, %v3933_v22  ;;  %3126 = vmatprep.subr.bf16.mxu0 %v3645_v0 }
 0x199   :  { %3116 = vmatpush3.bf16.msra.mxu1 %v3841_v14  ;;  %2723 = vmatprep.mubr.msk.f32.mxu1 %vm3647_vm1, %v3646_v1 }
 0x19a   :  { %3117 = vmatprep.subr.bf16.mxu1 %v3645_v0 }
 0x19d   :  { %3119 = vmatpush3.bf16.msra.mxu1 %v3844_v16 }
 0x19e   :  { %3120 = vmatprep.subr.bf16.mxu1 %v3645_v0 }
 0x1a1   :  { %3122 = vmatpush3.bf16.msra.mxu1 %v3855_v23 }
 0x1a2   :  { %3123 = vmatprep.subr.bf16.mxu1 %v3645_v0 }
 0x1a5   :  { %3125 = vmatpush3.bf16.msra.mxu1 %v3863_v29 }
 0x1a6   :  { %3138 = vmatprep.subr.bf16.mxu1 %v3645_v0 }
 0x1fc   :  { %v418_v26 = vpop.permute.xlu0 %417 }
 0x1fd   :  { %421 = vst.msk [vmem:[#allocation15 + $0xe] sm:$0x3] %vm414_vm5, %v418_v26 }
 0x25b   :  { %v492_v28 = vpop.f32.mrb[2].mxu1  ;;  %v562_v30 = vpop.f32.mrb[4].mxu0 }
 0x25c   :  { %v638_v32 = vadd.f32 %v637_v27, %v492_v28  ;;  %v2649_v35 = vpop.f32.mrb[3].mxu1  ;;  %v2668_v36 = vpop.f32.mrb[5].mxu0  ;;  %v647_v39 = vadd.f32 %v646_v33, %v562_v30 }
 0x25e   :  { %v2319_v38 = vmul.f32 -1.442695, %v638_v32  ;;  %v2320_v41 = vmul.f32 -1.442695, %v647_v39  ;;  %v916_v39 = vld [vmem:[#allocation8 + $0x4] sm:$0x3] }
 0x260   :  { %3354 = vpow2.f32 %v2319_v38 }
 0x261   :  { %3356 = vpow2.f32 %v2320_v41 }
 0x26a   :  { %v3355_v42 = vpop.eup %3354 }
 0x26b   :  { %v642_v43 = vadd.f32 1.0, %v3355_v42  ;;  %v632_v44 = vpop.f32.mrb[4].mxu1  ;;  %v3357_v46 = vpop.eup %3356 }
 0x26c   :  { %v2687_v45 = vpop.f32.mrb[5].mxu1  ;;  %v651_v47 = vadd.f32 1.0, %v3357_v46  ;;  %v633_v48 = vadd.f32 %v3919_v57, %v632_v44 }
 0x26d   :  { %3358 = vrcp.f32 %v642_v43  ;;  %v3652_v43 = vmov 5  }
 0x26e   :  { %3360 = vrcp.f32 %v651_v47  ;;  %v927_v44 = vsel %vm152_vm3, 2, %v3652_v43 }
 0x26f   :  { %vm928_vm7 = vcmp.lt.s32.totalorder %v927_v44, %v3927_v7 }
 0x277   :  { %v3359_v49 = vpop.eup %3358 }
 0x278   :  { %v656_v51 = vmul.f32 %v3359_v49, %v633_v48  ;;  %v3361_v55 = vpop.eup %3360  ;;  %v2327_v48 = vsel %vm928_vm7, 1.0, %v3646_v1 }
 0x279   :  { %v659_v56 = vsub.f32 1.0, %v3361_v55  ;;  %v661_v61 = vmul.f32 %v3361_v55, %v3933_v22 }
 0x27a   :  { %v657_v52 = vadd.f32 %v656_v51, %v655_v50 }
 0x27c   :  { %3362 = vtanh.f32 %v657_v52  ;;  %v932_v52 = vsub.f32 1.0, %v2327_v48 }
 0x286   :  { %v3363_v58 = vpop.eup %3362 }
 0x287   :  { %v660_v62 = vmul.f32 %v3363_v58, %v659_v56 }
 0x289   :  { %v662_v63 = vadd.f32 %v661_v61, %v660_v62 }
 0x28b   :  { %v670_v4 = vmul.f32 %v2321_v59, %v662_v63 }
 0x28d   :  { %v3982_v8 = vadd.f32 %v672_v5, %v670_v4 }
 0x28f   :  { %2705 = vmatmul.mubr.msk.f32.vlgmr.msra.gmra.mrb[6].mxu0 %vm155_vm2, %v3982_v8  ;;  %2724 = vmatmul.mubr.msk.f32.vlgmr.msra.gmra.mrb[6].mxu1 %vm155_vm2, %v3982_v8  ;;  %v674_v10 = vmul.f32 %v2321_v59, %v3982_v8  ;;  %v933_v54 = vmul.f32 %v932_v52, %v3982_v8  ;;  %v1159_v59 = vld [vmem:[#allocation3 + $0x6] sm:$0x3]  ;;  %v1429_v52 = vld [vmem:[#allocation6 + $0x8] sm:$0x3] }
 0x290   :  { %3128 = vmatpush3.bf16.msra.mxu0 %v3869_v31  ;;  %2742 = vmatprep.mubr.msk.f32.mxu0 %vm3647_vm1, %v3646_v1 }
 0x291   :  { %678 = vrot.lane.b32.xlu1 %v674_v10, %s3650_s12  ;;  %676 = vst.msk [vmem:[#allocation14 + $0x2] sm:$0x3] %vm414_vm5, %v674_v10  ;;  %3129 = vmatprep.subr.bf16.mxu0 %v3645_v0 }
 0x292   :  { %3140 = vmatpush3.bf16.msra.mxu1 %v3835_v6  ;;  %2761 = vmatprep.mubr.msk.f32.mxu1 %vm3647_vm1, %v3646_v1 }
 0x293   :  { %3141 = vmatprep.subr.bf16.mxu1 %v3645_v0 }
 0x294   :  { %3131 = vmatpush3.bf16.msra.mxu0 %v3876_v34 }
 0x295   :  { %3132 = vmatprep.subr.bf16.mxu0 %v3645_v0 }
 0x296   :  { %3143 = vmatpush3.bf16.msra.mxu1 %v3838_v9 }
 0x297   :  { %3144 = vmatprep.subr.bf16.mxu1 %v3645_v0 }
 0x298   :  { %3134 = vmatpush3.bf16.msra.mxu0 %v3888_v37 }
 0x299   :  { %3135 = vmatprep.subr.bf16.mxu0 %v3645_v0 }
 0x29a   :  { %3146 = vmatpush3.bf16.msra.mxu1 %v3847_v17 }
 0x29b   :  { %3147 = vmatprep.subr.bf16.mxu1 %v3645_v0 }
 0x29c   :  { %3137 = vmatpush3.bf16.msra.mxu0 %v3894_v40 }
 0x29d   :  { %3150 = vmatprep.subr.bf16.mxu0 %v3645_v0 }
 0x29e   :  { %3149 = vmatpush3.bf16.msra.mxu1 %v3858_v24 }
 0x29f   :  { %2743 = vmatmul.mubr.msk.f32.vlgmr.msra.gmra.mrb[8].mxu0 %vm155_vm2, %v3982_v8  ;;  %3162 = vmatprep.subr.bf16.mxu1 %v3645_v0 }
 0x2a0   :  { %3152 = vmatpush3.bf16.msra.mxu0 %v3841_v14  ;;  %2780 = vmatprep.mubr.msk.f32.mxu0 %vm3647_vm1, %v3646_v1 }
 0x2a1   :  { %3153 = vmatprep.subr.bf16.mxu0 %v3645_v0 }
 0x2a4   :  { %3155 = vmatpush3.bf16.msra.mxu0 %v3844_v16 }
 0x2a5   :  { %3156 = vmatprep.subr.bf16.mxu0 %v3645_v0 }
 0x2a8   :  { %3158 = vmatpush3.bf16.msra.mxu0 %v3855_v23 }
 0x2a9   :  { %3159 = vmatprep.subr.bf16.mxu0 %v3645_v0 }
 0x2ac   :  { %3161 = vmatpush3.bf16.msra.mxu0 %v3863_v29 }
 0x2ad   :  { %3174 = vmatprep.subr.bf16.mxu0 %v3645_v0 }
 0x303   :  { %v679_v11 = vpop.permute.xlu1 %678 }
 0x304   :  { %682 = vst.msk [vmem:[#allocation15 + $0xc] sm:$0x3] %vm414_vm5, %v679_v11 }
 0x362   :  { %v753_v13 = vpop.f32.mrb[6].mxu0  ;;  %v823_v15 = vpop.f32.mrb[6].mxu1 }
 0x363   :  { %v899_v18 = vadd.f32 %v898_v12, %v753_v13  ;;  %v2706_v20 = vpop.f32.mrb[7].mxu0  ;;  %v2725_v21 = vpop.f32.mrb[7].mxu1  ;;  %v908_v25 = vadd.f32 %v907_v19, %v823_v15 }
 0x365   :  { %v2325_v22 = vmul.f32 -1.442695, %v899_v18  ;;  %v2326_v26 = vmul.f32 -1.442695, %v908_v25  ;;  %v1177_v25 = vld [vmem:[#allocation8 + $0x6] sm:$0x3] }
 0x367   :  { %3364 = vpow2.f32 %v2325_v22 }
 0x368   :  { %3366 = vpow2.f32 %v2326_v26 }
 0x371   :  { %v3365_v27 = vpop.eup %3364 }
 0x372   :  { %v903_v28 = vadd.f32 1.0, %v3365_v27  ;;  %v893_v30 = vpop.f32.mrb[8].mxu0  ;;  %v3367_v33 = vpop.eup %3366 }
 0x373   :  { %v2744_v32 = vpop.f32.mrb[9].mxu0  ;;  %v912_v35 = vadd.f32 1.0, %v3367_v33  ;;  %v894_v36 = vadd.f32 %v3919_v57, %v893_v30 }
 0x374   :  { %3368 = vrcp.f32 %v903_v28  ;;  %v3653_v28 = vmov 4  }
 0x375   :  { %3370 = vrcp.f32 %v912_v35  ;;  %v1188_v30 = vsel %vm152_vm3, 3, %v3653_v28 }
 0x376   :  { %vm1189_vm8 = vcmp.lt.s32.totalorder %v1188_v30, %v3927_v7 }
 0x37e   :  { %v3369_v38 = vpop.eup %3368 }
 0x37f   :  { %v917_v41 = vmul.f32 %v3369_v38, %v894_v36  ;;  %v3371_v45 = vpop.eup %3370  ;;  %v2333_v36 = vsel %vm1189_vm8, 1.0, %v3646_v1 }
 0x380   :  { %v920_v46 = vsub.f32 1.0, %v3371_v45  ;;  %v922_v49 = vmul.f32 %v3371_v45, %v3982_v8 }
 0x381   :  { %v918_v42 = vadd.f32 %v917_v41, %v916_v39 }
 0x383   :  { %3372 = vtanh.f32 %v918_v42  ;;  %v1193_v42 = vsub.f32 1.0, %v2333_v36 }
 0x38d   :  { %v3373_v47 = vpop.eup %3372 }
 0x38e   :  { %v921_v50 = vmul.f32 %v3373_v47, %v920_v46 }
 0x390   :  { %v923_v51 = vadd.f32 %v922_v49, %v921_v50 }
 0x392   :  { %v931_v53 = vmul.f32 %v2327_v48, %v923_v51 }
 0x394   :  { %v4031_v55 = vadd.f32 %v933_v54, %v931_v53 }
 0x396   :  { %2762 = vmatmul.mubr.msk.f32.vlgmr.msra.gmra.mrb[8].mxu1 %vm155_vm2, %v4031_v55  ;;  %2781 = vmatmul.mubr.msk.f32.vlgmr.msra.gmra.mrb[10].mxu0 %vm155_vm2, %v4031_v55  ;;  %v935_v56 = vmul.f32 %v2327_v48, %v4031_v55  ;;  %v1194_v44 = vmul.f32 %v1193_v42, %v4031_v55  ;;  %v1420_v48 = vld [vmem:[#allocation3 + $0x8] sm:$0x3]  ;;  %v1690_v42 = vld [vmem:[#allocation6 + $0xa] sm:$0x3] }
 0x397   :  { %3164 = vmatpush3.bf16.msra.mxu1 %v3869_v31  ;;  %2799 = vmatprep.mubr.msk.f32.mxu1 %vm3647_vm1, %v3646_v1 }
 0x398   :  { %939 = vrot.lane.b32.xlu1 %v935_v56, %s3650_s12  ;;  %937 = vst.msk [vmem:[#allocation14 + $0x4] sm:$0x3] %vm414_vm5, %v935_v56  ;;  %3165 = vmatprep.subr.bf16.mxu1 %v3645_v0 }
 0x399   :  { %3176 = vmatpush3.bf16.msra.mxu0 %v3835_v6  ;;  %2818 = vmatprep.mubr.msk.f32.mxu0 %vm3647_vm1, %v3646_v1 }
 0x39a   :  { %3177 = vmatprep.subr.bf16.mxu0 %v3645_v0 }
 0x39b   :  { %3167 = vmatpush3.bf16.msra.mxu1 %v3876_v34 }
 0x39c   :  { %3168 = vmatprep.subr.bf16.mxu1 %v3645_v0 }
 0x39d   :  { %3179 = vmatpush3.bf16.msra.mxu0 %v3838_v9 }
 0x39e   :  { %3180 = vmatprep.subr.bf16.mxu0 %v3645_v0 }
 0x39f   :  { %3170 = vmatpush3.bf16.msra.mxu1 %v3888_v37 }
 0x3a0   :  { %3171 = vmatprep.subr.bf16.mxu1 %v3645_v0 }
 0x3a1   :  { %3182 = vmatpush3.bf16.msra.mxu0 %v3847_v17 }
 0x3a2   :  { %3183 = vmatprep.subr.bf16.mxu0 %v3645_v0 }
 0x3a3   :  { %3173 = vmatpush3.bf16.msra.mxu1 %v3894_v40 }
 0x3a4   :  { %3186 = vmatprep.subr.bf16.mxu1 %v3645_v0 }
 0x3a5   :  { %3185 = vmatpush3.bf16.msra.mxu0 %v3858_v24 }
 0x3a6   :  { %2800 = vmatmul.mubr.msk.f32.vlgmr.msra.gmra.mrb[10].mxu1 %vm155_vm2, %v4031_v55  ;;  %3198 = vmatprep.subr.bf16.mxu0 %v3645_v0 }
 0x3a7   :  { %3188 = vmatpush3.bf16.msra.mxu1 %v3841_v14  ;;  %2837 = vmatprep.mubr.msk.f32.mxu1 %vm3647_vm1, %v3646_v1 }
 0x3a8   :  { %3189 = vmatprep.subr.bf16.mxu1 %v3645_v0 }
 0x3ab   :  { %3191 = vmatpush3.bf16.msra.mxu1 %v3844_v16 }
 0x3ac   :  { %3192 = vmatprep.subr.bf16.mxu1 %v3645_v0 }
 0x3af   :  { %3194 = vmatpush3.bf16.msra.mxu1 %v3855_v23 }
 0x3b0   :  { %3195 = vmatprep.subr.bf16.mxu1 %v3645_v0 }
 0x3b3   :  { %3197 = vmatpush3.bf16.msra.mxu1 %v3863_v29 }
 0x3b4   :  { %3210 = vmatprep.subr.bf16.mxu1 %v3645_v0 }
 0x40a   :  { %v940_v58 = vpop.permute.xlu1 %939 }
 0x40b   :  { %943 = vst.msk [vmem:[#allocation15 + $0xa] sm:$0x3] %vm414_vm5, %v940_v58 }
 0x469   :  { %v1014_v61 = vpop.f32.mrb[8].mxu1  ;;  %v1084_v62 = vpop.f32.mrb[10].mxu0 }
 0x46a   :  { %v1160_v63 = vadd.f32 %v1159_v59, %v1014_v61  ;;  %v2763_v4 = vpop.f32.mrb[9].mxu1  ;;  %v2782_v5 = vpop.f32.mrb[11].mxu0  ;;  %v1169_v10 = vadd.f32 %v1168_v3, %v1084_v62 }
 0x46c   :  { %v2331_v8 = vmul.f32 -1.442695, %v1160_v63  ;;  %v2332_v11 = vmul.f32 -1.442695, %v1169_v10  ;;  %v1438_v10 = vld [vmem:[#allocation8 + $0x8] sm:$0x3] }
 0x46e   :  { %3374 = vpow2.f32 %v2331_v8 }
 0x46f   :  { %3376 = vpow2.f32 %v2332_v11 }
 0x478   :  { %v3375_v12 = vpop.eup %3374 }
 0x479   :  { %v1164_v13 = vadd.f32 1.0, %v3375_v12  ;;  %v1154_v15 = vpop.f32.mrb[10].mxu1  ;;  %v3377_v19 = vpop.eup %3376 }
 0x47a   :  { %v2801_v18 = vpop.f32.mrb[11].mxu1  ;;  %v1173_v20 = vadd.f32 1.0, %v3377_v19  ;;  %v1155_v21 = vadd.f32 %v3919_v57, %v1154_v15 }
 0x47b   :  { %3378 = vrcp.f32 %v1164_v13  ;;  %v3654_v13 = vmov 3  }
 0x47c   :  { %3380 = vrcp.f32 %v1173_v20  ;;  %v1449_v15 = vsel %vm152_vm3, 4, %v3654_v13 }
 0x47d   :  { %vm1450_vm9 = vcmp.lt.s32.totalorder %v1449_v15, %v3927_v7 }
 0x485   :  { %v3379_v22 = vpop.eup %3378 }
 0x486   :  { %v1178_v26 = vmul.f32 %v3379_v22, %v1155_v21  ;;  %v3381_v32 = vpop.eup %3380  ;;  %v2339_v21 = vsel %vm1450_vm9, 1.0, %v3646_v1 }
 0x487   :  { %v1181_v33 = vsub.f32 1.0, %v3381_v32  ;;  %v1183_v38 = vmul.f32 %v3381_v32, %v4031_v55 }
 0x488   :  { %v1179_v27 = vadd.f32 %v1178_v26, %v1177_v25 }
 0x48a   :  { %3382 = vtanh.f32 %v1179_v27  ;;  %v1454_v27 = vsub.f32 1.0, %v2339_v21 }
 0x494   :  { %v3383_v35 = vpop.eup %3382 }
 0x495   :  { %v1182_v39 = vmul.f32 %v3383_v35, %v1181_v33 }
 0x497   :  { %v1184_v41 = vadd.f32 %v1183_v38, %v1182_v39 }
 0x499   :  { %v1192_v43 = vmul.f32 %v2333_v36, %v1184_v41 }
 0x49b   :  { %v4080_v45 = vadd.f32 %v1194_v44, %v1192_v43 }
 0x49d   :  { %2819 = vmatmul.mubr.msk.f32.vlgmr.msra.gmra.mrb[12].mxu0 %vm155_vm2, %v4080_v45  ;;  %2838 = vmatmul.mubr.msk.f32.vlgmr.msra.gmra.mrb[12].mxu1 %vm155_vm2, %v4080_v45  ;;  %v1196_v46 = vmul.f32 %v2333_v36, %v4080_v45  ;;  %v1455_v30 = vmul.f32 %v1454_v27, %v4080_v45  ;;  %v1681_v36 = vld [vmem:[#allocation3 + $0xa] sm:$0x3] }
 0x49e   :  { %3200 = vmatpush3.bf16.msra.mxu0 %v3869_v31  ;;  %2856 = vmatprep.mubr.msk.f32.mxu0 %vm3647_vm1, %v3646_v1 }
 0x49f   :  { %1200 = vrot.lane.b32.xlu0 %v1196_v46, %s3650_s12  ;;  %1198 = vst.msk [vmem:[#allocation14 + $0x6] sm:$0x3] %vm414_vm5, %v1196_v46  ;;  %3201 = vmatprep.subr.bf16.mxu0 %v3645_v0 }
 0x4a0   :  { %3212 = vmatpush3.bf16.msra.mxu1 %v3835_v6  ;;  %2875 = vmatprep.mubr.msk.f32.mxu1 %vm3647_vm1, %v3646_v1 }
 0x4a1   :  { %3213 = vmatprep.subr.bf16.mxu1 %v3645_v0 }
 0x4a2   :  { %3203 = vmatpush3.bf16.msra.mxu0 %v3876_v34 }
 0x4a3   :  { %3204 = vmatprep.subr.bf16.mxu0 %v3645_v0 }
 0x4a4   :  { %3215 = vmatpush3.bf16.msra.mxu1 %v3838_v9 }
 0x4a5   :  { %3216 = vmatprep.subr.bf16.mxu1 %v3645_v0 }
 0x4a6   :  { %3206 = vmatpush3.bf16.msra.mxu0 %v3888_v37 }
 0x4a7   :  { %3207 = vmatprep.subr.bf16.mxu0 %v3645_v0 }
 0x4a8   :  { %3218 = vmatpush3.bf16.msra.mxu1 %v3847_v17 }
 0x4a9   :  { %3219 = vmatprep.subr.bf16.mxu1 %v3645_v0 }
 0x4aa   :  { %3209 = vmatpush3.bf16.msra.mxu0 %v3894_v40 }
 0x4ab   :  { %3222 = vmatprep.subr.bf16.mxu0 %v3645_v0 }
 0x4ac   :  { %3221 = vmatpush3.bf16.msra.mxu1 %v3858_v24 }
 0x4ad   :  { %2857 = vmatmul.mubr.msk.f32.vlgmr.msra.gmra.mrb[14].mxu0 %vm155_vm2, %v4080_v45  ;;  %3234 = vmatprep.subr.bf16.mxu1 %v3645_v0 }
 0x4ae   :  { %3224 = vmatpush3.bf16.msra.mxu0 %v3841_v14  ;;  %2894 = vmatprep.mubr.msk.f32.mxu0 %vm3647_vm1, %v3646_v1 }
 0x4af   :  { %3225 = vmatprep.subr.bf16.mxu0 %v3645_v0 }
 0x4b2   :  { %3227 = vmatpush3.bf16.msra.mxu0 %v3844_v16 }
 0x4b3   :  { %3228 = vmatprep.subr.bf16.mxu0 %v3645_v0 }
 0x4b6   :  { %3230 = vmatpush3.bf16.msra.mxu0 %v3855_v23 }
 0x4b7   :  { %3231 = vmatprep.subr.bf16.mxu0 %v3645_v0 }
 0x4ba   :  { %3233 = vmatpush3.bf16.msra.mxu0 %v3863_v29 }
 0x4bb   :  { %3246 = vmatprep.subr.bf16.mxu0 %v3645_v0 }
 0x511   :  { %v1201_v47 = vpop.permute.xlu0 %1200 }
 0x512   :  { %1204 = vst.msk [vmem:[#allocation15 + $0x8] sm:$0x3] %vm414_vm5, %v1201_v47 }
 0x570   :  { %v1275_v49 = vpop.f32.mrb[12].mxu0  ;;  %v1345_v50 = vpop.f32.mrb[12].mxu1 }
 0x571   :  { %v1421_v51 = vadd.f32 %v1420_v48, %v1275_v49  ;;  %v2820_v53 = vpop.f32.mrb[13].mxu0  ;;  %v2839_v54 = vpop.f32.mrb[13].mxu1  ;;  %v1430_v56 = vadd.f32 %v1429_v52, %v1345_v50 }
 0x573   :  { %v2337_v55 = vmul.f32 -1.442695, %v1421_v51  ;;  %v2338_v58 = vmul.f32 -1.442695, %v1430_v56  ;;  %v1699_v56 = vld [vmem:[#allocation8 + $0xa] sm:$0x3] }
 0x575   :  { %3384 = vpow2.f32 %v2337_v55 }
 0x576   :  { %3386 = vpow2.f32 %v2338_v58 }
 0x57f   :  { %v3385_v59 = vpop.eup %3384 }
 0x580   :  { %v1425_v61 = vadd.f32 1.0, %v3385_v59  ;;  %v1415_v62 = vpop.f32.mrb[14].mxu0  ;;  %v3387_v3 = vpop.eup %3386 }
 0x581   :  { %v2858_v63 = vpop.f32.mrb[15].mxu0  ;;  %v1434_v4 = vadd.f32 1.0, %v3387_v3  ;;  %v1416_v5 = vadd.f32 %v3919_v57, %v1415_v62 }
 0x582   :  { %3388 = vrcp.f32 %v1425_v61  ;;  %v3655_v61 = vmov 2  }
 0x583   :  { %3390 = vrcp.f32 %v1434_v4  ;;  %v1710_v62 = vsel %vm152_vm3, 5, %v3655_v61 }
 0x584   :  { %vm1711_vm10 = vcmp.lt.s32.totalorder %v1710_v62, %v3927_v7 }
 0x58c   :  { %v3389_v8 = vpop.eup %3388 }
 0x58d   :  { %v1439_v11 = vmul.f32 %v3389_v8, %v1416_v5  ;;  %v3391_v18 = vpop.eup %3390  ;;  %v2345_v5 = vsel %vm1711_vm10, 1.0, %v3646_v1 }
 0x58e   :  { %v1442_v19 = vsub.f32 1.0, %v3391_v18  ;;  %v1444_v22 = vmul.f32 %v3391_v18, %v4080_v45 }
 0x58f   :  { %v1440_v12 = vadd.f32 %v1439_v11, %v1438_v10 }
 0x591   :  { %3392 = vtanh.f32 %v1440_v12  ;;  %v1715_v12 = vsub.f32 1.0, %v2345_v5 }
 0x59b   :  { %v3393_v20 = vpop.eup %3392 }
 0x59c   :  { %v1443_v25 = vmul.f32 %v3393_v20, %v1442_v19  ;;  %v1951_v20 = vld [vmem:[#allocation6 + $0xc] sm:$0x3] }
 0x59e   :  { %v1445_v26 = vadd.f32 %v1444_v22, %v1443_v25 }
 0x5a0   :  { %v1453_v28 = vmul.f32 %v2339_v21, %v1445_v26 }
 0x5a2   :  { %v4129_v32 = vadd.f32 %v1455_v30, %v1453_v28 }
 0x5a4   :  { %2876 = vmatmul.mubr.msk.f32.vlgmr.msra.gmra.mrb[14].mxu1 %vm155_vm2, %v4129_v32  ;;  %2895 = vmatmul.mubr.msk.f32.vlgmr.msra.gmra.mrb[16].mxu0 %vm155_vm2, %v4129_v32  ;;  %v1457_v33 = vmul.f32 %v2339_v21, %v4129_v32  ;;  %v1716_v15 = vmul.f32 %v1715_v12, %v4129_v32 }
 0x5a5   :  { %3236 = vmatpush3.bf16.msra.mxu1 %v3869_v31  ;;  %2913 = vmatprep.mubr.msk.f32.mxu1 %vm3647_vm1, %v3646_v1 }
 0x5a6   :  { %1461 = vrot.lane.b32.xlu1 %v1457_v33, %s3650_s12  ;;  %1459 = vst.msk [vmem:[#allocation14 + $0x8] sm:$0x3] %vm414_vm5, %v1457_v33  ;;  %3237 = vmatprep.subr.bf16.mxu1 %v3645_v0 }
 0x5a7   :  { %3248 = vmatpush3.bf16.msra.mxu0 %v3835_v6  ;;  %2932 = vmatprep.mubr.msk.f32.mxu0 %vm3647_vm1, %v3646_v1 }
 0x5a8   :  { %3249 = vmatprep.subr.bf16.mxu0 %v3645_v0 }
 0x5a9   :  { %3239 = vmatpush3.bf16.msra.mxu1 %v3876_v34 }
 0x5aa   :  { %3240 = vmatprep.subr.bf16.mxu1 %v3645_v0 }
 0x5ab   :  { %3251 = vmatpush3.bf16.msra.mxu0 %v3838_v9 }
 0x5ac   :  { %3252 = vmatprep.subr.bf16.mxu0 %v3645_v0 }
 0x5ad   :  { %3242 = vmatpush3.bf16.msra.mxu1 %v3888_v37 }
 0x5ae   :  { %3243 = vmatprep.subr.bf16.mxu1 %v3645_v0 }
 0x5af   :  { %3254 = vmatpush3.bf16.msra.mxu0 %v3847_v17 }
 0x5b0   :  { %3255 = vmatprep.subr.bf16.mxu0 %v3645_v0 }
 0x5b1   :  { %3245 = vmatpush3.bf16.msra.mxu1 %v3894_v40 }
 0x5b2   :  { %3258 = vmatprep.subr.bf16.mxu1 %v3645_v0 }
 0x5b3   :  { %3257 = vmatpush3.bf16.msra.mxu0 %v3858_v24 }
 0x5b4   :  { %2914 = vmatmul.mubr.msk.f32.vlgmr.msra.gmra.mrb[16].mxu1 %vm155_vm2, %v4129_v32  ;;  %3270 = vmatprep.subr.bf16.mxu0 %v3645_v0 }
 0x5b5   :  { %3260 = vmatpush3.bf16.msra.mxu1 %v3841_v14  ;;  %2951 = vmatprep.mubr.msk.f32.mxu1 %vm3647_vm1, %v3646_v1 }
 0x5b6   :  { %3261 = vmatprep.subr.bf16.mxu1 %v3645_v0 }
 0x5b9   :  { %3263 = vmatpush3.bf16.msra.mxu1 %v3844_v16 }
 0x5ba   :  { %3264 = vmatprep.subr.bf16.mxu1 %v3645_v0 }
 0x5bd   :  { %3266 = vmatpush3.bf16.msra.mxu1 %v3855_v23 }
 0x5be   :  { %3267 = vmatprep.subr.bf16.mxu1 %v3645_v0 }
 0x5c1   :  { %3269 = vmatpush3.bf16.msra.mxu1 %v3863_v29 }
 0x5c2   :  { %3282 = vmatprep.subr.bf16.mxu1 %v3645_v0 }
 0x618   :  { %v1462_v35 = vpop.permute.xlu1 %1461 }
 0x619   :  { %1465 = vst.msk [vmem:[#allocation15 + $0x6] sm:$0x3] %vm414_vm5, %v1462_v35 }
 0x677   :  { %v1536_v38 = vpop.f32.mrb[14].mxu1  ;;  %v1606_v39 = vpop.f32.mrb[16].mxu0 }
 0x678   :  { %v1682_v41 = vadd.f32 %v1681_v36, %v1536_v38  ;;  %v2877_v43 = vpop.f32.mrb[15].mxu1  ;;  %v2896_v44 = vpop.f32.mrb[17].mxu0  ;;  %v1691_v46 = vadd.f32 %v1690_v42, %v1606_v39  ;;  %v1960_v36 = vld [vmem:[#allocation8 + $0xc] sm:$0x3] }
 0x67a   :  { %v2343_v45 = vmul.f32 -1.442695, %v1682_v41  ;;  %v2344_v47 = vmul.f32 -1.442695, %v1691_v46  ;;  %v3656_v41 = vmov 1  }
 0x67b   :  { %v1971_v42 = vsel %vm152_vm3, 6, %v3656_v41 }
 0x67c   :  { %3394 = vpow2.f32 %v2343_v45  ;;  %vm1972_vm11 = vcmp.lt.s32.totalorder %v1971_v42, %v3927_v7 }
 0x67d   :  { %3396 = vpow2.f32 %v2344_v47  ;;  %v2351_v46 = vsel %vm1972_vm11, 1.0, %v3646_v1 }
 0x686   :  { %v3395_v48 = vpop.eup %3394 }
 0x687   :  { %v1686_v49 = vadd.f32 1.0, %v3395_v48  ;;  %v1676_v50 = vpop.f32.mrb[16].mxu1  ;;  %v3397_v52 = vpop.eup %3396 }
 0x688   :  { %v2915_v51 = vpop.f32.mrb[17].mxu1  ;;  %v1695_v53 = vadd.f32 1.0, %v3397_v52  ;;  %v1677_v54 = vadd.f32 %v3919_v57, %v1676_v50 }
 0x689   :  { %3398 = vrcp.f32 %v1686_v49  ;;  %v1976_v49 = vsub.f32 1.0, %v2351_v46 }
 0x68a   :  { %3400 = vrcp.f32 %v1695_v53 }
 0x693   :  { %v3399_v55 = vpop.eup %3398 }
 0x694   :  { %v1700_v58 = vmul.f32 %v3399_v55, %v1677_v54  ;;  %v3401_v63 = vpop.eup %3400  ;;  %v2203_v54 = vld [vmem:[#allocation3 + $0xe] sm:$0x3] }
 0x695   :  { %v1703_v3 = vsub.f32 1.0, %v3401_v63  ;;  %v1705_v8 = vmul.f32 %v3401_v63, %v4129_v32 }
 0x696   :  { %v1701_v59 = vadd.f32 %v1700_v58, %v1699_v56 }
 0x698   :  { %3402 = vtanh.f32 %v1701_v59  ;;  %v2212_v59 = vld [vmem:[#allocation6 + $0xe] sm:$0x3] }
 0x6a2   :  { %v3403_v4 = vpop.eup %3402 }
 0x6a3   :  { %v1704_v10 = vmul.f32 %v3403_v4, %v1703_v3 }
 0x6a5   :  { %v1706_v11 = vadd.f32 %v1705_v8, %v1704_v10  ;;  %v3424_v10 = vld [vmem:[%s4303_s7] ss:$0 sm:$0xff]  ;;  %s3657_s7 = smov [#allocation14]  }
 0x6a6   :  { %s2259_s16 = sshll.u32 %s3657_s7, 4  ;;  %s2260_s16 = int_to_ptr.vmem [resolvable:$true] %s2259_s16 }
 0x6a7   :  { %v1714_v13 = vmul.f32 %v2345_v5, %v1706_v11  ;;  %s3557_s15 = scalar_lea.vmem %s2260_s16, 256  ;;  %p3562_p7 = scmp.lt.s32.totalorder %s2260_s16, %s2260_s16 }
 0x6a8   :  { %p3558_p6 = scmp.ne.s32.totalorder %s2260_s16, %s3557_s15  ;;  %p3563_p8 = scmp.lt.s32.totalorder %s3557_s15, %s3557_s15 }
 0x6a9   :  { %v4178_v18 = vadd.f32 %v1716_v15, %v1714_v13  ;;  %v2221_v13 = vld [vmem:[#allocation8 + $0xe] sm:$0x3] }
 0x6aa   :  { %p3564_p9 = por %p3563_p8, %p3562_p7 }
 0x6ab   :  { %2933 = vmatmul.mubr.msk.f32.vlgmr.msra.gmra.mrb[18].mxu0 %vm155_vm2, %v4178_v18  ;;  %2952 = vmatmul.mubr.msk.f32.vlgmr.msra.gmra.mrb[18].mxu1 %vm155_vm2, %v4178_v18  ;;  %v1718_v19 = vmul.f32 %v2345_v5, %v4178_v18  ;;  %v1977_v51 = vmul.f32 %v1976_v49, %v4178_v18 }
 0x6ac   :  { %3272 = vmatpush3.bf16.msra.mxu0 %v3869_v31  ;;  %2970 = vmatprep.mubr.msk.f32.mxu0 %vm3647_vm1, %v3646_v1  ;;  %p3565_p10 = pnand %p3564_p9, %p3558_p6 }
 0x6ad   :  { %1722 = vrot.lane.b32.xlu0 %v1718_v19, %s3650_s12  ;;  %1720 = vst.msk [vmem:[#allocation14 + $0xa] sm:$0x3] %vm414_vm5, %v1718_v19  ;;  %3273 = vmatprep.subr.bf16.mxu0 %v3645_v0  ;;  %v2232_v19 = vsel %vm152_vm3, 7, %v3648_v2 }
 0x6ae   :  { %3284 = vmatpush3.bf16.msra.mxu1 %v3835_v6  ;;  %2989 = vmatprep.mubr.msk.f32.mxu1 %vm3647_vm1, %v3646_v1  ;;  %vm2233_vm12 = vcmp.lt.s32.totalorder %v2232_v19, %v3927_v7 }
 0x6af   :  { %3285 = vmatprep.subr.bf16.mxu1 %v3645_v0 }
 0x6b0   :  { %3275 = vmatpush3.bf16.msra.mxu0 %v3876_v34 }
 0x6b1   :  { %3276 = vmatprep.subr.bf16.mxu0 %v3645_v0 }
 0x6b2   :  { %3287 = vmatpush3.bf16.msra.mxu1 %v3838_v9  ;;  %v1942_v9 = vld [vmem:[#allocation3 + $0xc] sm:$0x3] }
 0x6b3   :  { %3288 = vmatprep.subr.bf16.mxu1 %v3645_v0 }
 0x6b4   :  { %3278 = vmatpush3.bf16.msra.mxu0 %v3888_v37 }
 0x6b5   :  { %3279 = vmatprep.subr.bf16.mxu0 %v3645_v0 }
 0x6b6   :  { %3290 = vmatpush3.bf16.msra.mxu1 %v3847_v17 }
 0x6b7   :  { %3291 = vmatprep.subr.bf16.mxu1 %v3645_v0 }
 0x6b8   :  { %3281 = vmatpush3.bf16.msra.mxu0 %v3894_v40 }
 0x6b9   :  { %3294 = vmatprep.subr.bf16.mxu0 %v3645_v0 }
 0x6ba   :  { %3293 = vmatpush3.bf16.msra.mxu1 %v3858_v24 }
 0x6bb   :  { %2971 = vmatmul.mubr.msk.f32.vlgmr.msra.gmra.mrb[20].mxu0 %vm155_vm2, %v4178_v18  ;;  %3306 = vmatprep.subr.bf16.mxu1 %v3645_v0 }
 0x6bc   :  { %3296 = vmatpush3.bf16.msra.mxu0 %v3841_v14  ;;  %3008 = vmatprep.mubr.msk.f32.mxu0 %vm3647_vm1, %v3646_v1 }
 0x6bd   :  { %3297 = vmatprep.subr.bf16.mxu0 %v3645_v0 }
 0x6c0   :  { %3299 = vmatpush3.bf16.msra.mxu0 %v3844_v16 }
 0x6c1   :  { %3300 = vmatprep.subr.bf16.mxu0 %v3645_v0 }
 0x6c4   :  { %3302 = vmatpush3.bf16.msra.mxu0 %v3855_v23 }
 0x6c5   :  { %3303 = vmatprep.subr.bf16.mxu0 %v3645_v0 }
 0x6c8   :  { %3305 = vmatpush3.bf16.msra.mxu0 %v3863_v29 }
 0x71f   :  { %v1723_v6 = vpop.permute.xlu0 %1722 }
 0x720   :  { %1726 = vst.msk [vmem:[#allocation15 + $0x4] sm:$0x3] %vm414_vm5, %v1723_v6 }
 0x77e   :  { %v1797_v14 = vpop.f32.mrb[18].mxu0  ;;  %v1867_v17 = vpop.f32.mrb[18].mxu1 }
 0x77f   :  { %v1943_v24 = vadd.f32 %v1942_v9, %v1797_v14  ;;  %v2934_v21 = vpop.f32.mrb[19].mxu0  ;;  %v2953_v22 = vpop.f32.mrb[19].mxu1  ;;  %v1952_v16 = vadd.f32 %v1951_v20, %v1867_v17  ;;  %v2357_v17 = vsel %vm2233_vm12, 1.0, %v3646_v1 }
 0x780   :  { %v2237_v22 = vsub.f32 1.0, %v2357_v17 }
 0x781   :  { %v2349_v25 = vmul.f32 -1.442695, %v1943_v24  ;;  %v2350_v26 = vmul.f32 -1.442695, %v1952_v16 }
 0x783   :  { %3404 = vpow2.f32 %v2349_v25 }
 0x784   :  { %3406 = vpow2.f32 %v2350_v26 }
 0x78d   :  { %v3405_v23 = vpop.eup %3404 }
 0x78e   :  { %v1947_v27 = vadd.f32 1.0, %v3405_v23  ;;  %v1937_v28 = vpop.f32.mrb[20].mxu0  ;;  %v3407_v29 = vpop.eup %3406 }
 0x78f   :  { %v2972_v30 = vpop.f32.mrb[21].mxu0  ;;  %v1956_v32 = vadd.f32 1.0, %v3407_v29  ;;  %v1938_v33 = vadd.f32 %v3919_v57, %v1937_v28 }
 0x790   :  { %3408 = vrcp.f32 %v1947_v27 }
 0x791   :  { %3410 = vrcp.f32 %v1956_v32 }
 0x79a   :  { %v3409_v35 = vpop.eup %3408 }
 0x79b   :  { %v1961_v38 = vmul.f32 %v3409_v35, %v1938_v33  ;;  %v3411_v43 = vpop.eup %3410 }
 0x79c   :  { %v1964_v44 = vsub.f32 1.0, %v3411_v43  ;;  %v1966_v47 = vmul.f32 %v3411_v43, %v4178_v18 }
 0x79d   :  { %v1962_v39 = vadd.f32 %v1961_v38, %v1960_v36 }
 0x79f   :  { %3412 = vtanh.f32 %v1962_v39 }
 0x7a9   :  { %v3413_v45 = vpop.eup %3412 }
 0x7aa   :  { %v1965_v57 = vmul.f32 %v3413_v45, %v1964_v44 }
 0x7ac   :  { %v1967_v48 = vadd.f32 %v1966_v47, %v1965_v57 }
 0x7ae   :  { %v1975_v50 = vmul.f32 %v2351_v46, %v1967_v48 }
 0x7b0   :  { %v1978_v52 = vadd.f32 %v1977_v51, %v1975_v50 }
 0x7b2   :  { %2990 = vmatmul.mubr.msk.f32.vlgmr.msra.gmra.mrb[20].mxu1 %vm155_vm2, %v1978_v52  ;;  %3009 = vmatmul.mubr.msk.f32.vlgmr.msra.gmra.mrb[22].mxu0 %vm155_vm2, %v1978_v52  ;;  %v1979_v53 = vmul.f32 %v2351_v46, %v1978_v52  ;;  %v2238_v16 = vmul.f32 %v2237_v22, %v1978_v52 }
 0x7b3   :  { %3308 = vmatpush3.bf16.msra.mxu1 %v3869_v31  ;;  %3027 = vmatprep.mubr.msk.f32.mxu1 %vm3647_vm1, %v3646_v1 }
 0x7b4   :  { %1983 = vrot.lane.b32.xlu1 %v1979_v53, %s3650_s12  ;;  %1981 = vst.msk [vmem:[#allocation14 + $0xc] sm:$0x3] %vm414_vm5, %v1979_v53  ;;  %3309 = vmatprep.subr.bf16.mxu1 %v3645_v0 }
 0x7b7   :  { %3311 = vmatpush3.bf16.msra.mxu1 %v3876_v34 }
 0x7b8   :  { %3312 = vmatprep.subr.bf16.mxu1 %v3645_v0 }
 0x7bb   :  { %3314 = vmatpush3.bf16.msra.mxu1 %v3888_v37 }
 0x7bc   :  { %3315 = vmatprep.subr.bf16.mxu1 %v3645_v0 }
 0x7bf   :  { %3317 = vmatpush3.bf16.msra.mxu1 %v3894_v40 }
 0x7c2   :  { %3028 = vmatmul.mubr.msk.f32.vlgmr.msra.gmra.mrb[22].mxu1 %vm155_vm2, %v1978_v52 }
 0x826   :  { %v1984_v31 = vpop.permute.xlu1 %1983 }
 0x827   :  { %1987 = vst.msk [vmem:[#allocation15 + $0x2] sm:$0x3] %vm414_vm5, %v1984_v31 }
 0x885   :  { %v2058_v55 = vpop.f32.mrb[20].mxu1  ;;  %v2128_v56 = vpop.f32.mrb[22].mxu0 }
 0x886   :  { %v2204_v58 = vadd.f32 %v2203_v54, %v2058_v55  ;;  %v2991_v61 = vpop.f32.mrb[21].mxu1  ;;  %v3010_v34 = vpop.f32.mrb[23].mxu0  ;;  %v2213_v63 = vadd.f32 %v2212_v59, %v2128_v56 }
 0x888   :  { %v2355_v62 = vmul.f32 -1.442695, %v2204_v58  ;;  %v2356_v37 = vmul.f32 -1.442695, %v2213_v63 }
 0x88a   :  { %3414 = vpow2.f32 %v2355_v62 }
 0x88b   :  { %3416 = vpow2.f32 %v2356_v37 }
 0x894   :  { %v3415_v0 = vpop.eup %3414 }
 0x895   :  { %v2208_v3 = vadd.f32 1.0, %v3415_v0  ;;  %v2198_v40 = vpop.f32.mrb[22].mxu1  ;;  %v3417_v5 = vpop.eup %3416 }
 0x896   :  { %v3029_v4 = vpop.f32.mrb[23].mxu1  ;;  %v2217_v8 = vadd.f32 1.0, %v3417_v5  ;;  %v2199_v11 = vadd.f32 %v3424_v10, %v2198_v40 }
 0x897   :  { %3418 = vrcp.f32 %v2208_v3 }
 0x898   :  { %3420 = vrcp.f32 %v2217_v8 }
 0x8a1   :  { %v3419_v12 = vpop.eup %3418 }
 0x8a2   :  { %v2222_v15 = vmul.f32 %v3419_v12, %v2199_v11  ;;  %v3421_v6 = vpop.eup %3420 }
 0x8a3   :  { %v2225_v9 = vsub.f32 1.0, %v3421_v6  ;;  %v2227_v20 = vmul.f32 %v3421_v6, %v1978_v52 }
 0x8a4   :  { %v2223_v18 = vadd.f32 %v2222_v15, %v2221_v13 }
 0x8a6   :  { %3422 = vtanh.f32 %v2223_v18 }
 0x8b0   :  { %v3423_v14 = vpop.eup %3422 }
 0x8b1   :  { %v2226_v24 = vmul.f32 %v3423_v14, %v2225_v9 }
 0x8b3   :  { %v2228_v21 = vadd.f32 %v2227_v20, %v2226_v24 }
 0x8b5   :  { %v2236_v25 = vmul.f32 %v2357_v17, %v2228_v21 }
 0x8b7   :  { %v2239_v26 = vadd.f32 %v2238_v16, %v2236_v25 }
 0x8b9   :  { %v2240_v23 = vmul.f32 %v2357_v17, %v2239_v26  ;;  %2249 = vst.msk [vmem:[#allocation2] sm:$0x3] %vm122_vm0, %v2239_v26  ;;  %2253 = vst.msk [vmem:[#allocation17] sm:$0x3] %vm122_vm0, %v2239_v26 }
 0x8bb   :  { %2244 = vrot.lane.b32.xlu0 %v2240_v23, %s3650_s12  ;;  %2242 = vst.msk [vmem:[#allocation14 + $0xe] sm:$0x3] %vm414_vm5, %v2240_v23 }
 0x8bc   :  { %3568 = shalt.err (!%p3565_p10)
}
 0x8bd   :  { %s3569_s19 = scalar_lea.hbm %s4304_s8, 256 }
 0x8be   :  { %p3570_p11 = scmp.ne.s32.totalorder %s4304_s8, %s3569_s19  ;;  %p3573_p12 = scmp.lt.u32.totalorder %s3569_s19, %s4304_s8 }
 0x8c0   :  { %p3575_p13 = pnand %p3573_p12, %p3570_p11 }
 0x8c2   :  { %3578 = shalt.err (!%p3575_p13)
}
 0x8c3   :  { %2265 = dma.vmem_to_hbm [thread:$0]  %s2260_s16, 256, %s4304_s8, [#allocation5], %s3637_s25, %s3637_s25, %s3638_s26  }
 0x8c4   :  { %s3658_s28 = smov [#allocation15]   ;;  %s3659_s22 = smov [#allocation17]  }
 0x8c5   :  { %s2275_s1 = sshll.u32 %s3658_s28, 4  ;;  %s2288_s29 = sshll.u32 %s3659_s22, 4  ;;  %s2276_s1 = int_to_ptr.vmem [resolvable:$true] %s2275_s1  ;;  %s2289_s29 = int_to_ptr.vmem [resolvable:$true] %s2288_s29 }
 0x8c6   :  { %s3579_s11 = scalar_lea.vmem %s2276_s1, 256  ;;  %p3584_p1 = scmp.lt.s32.totalorder %s2276_s1, %s2276_s1 }
 0x8c7   :  { %p3580_p0 = scmp.ne.s32.totalorder %s2276_s1, %s3579_s11  ;;  %p3585_p2 = scmp.lt.s32.totalorder %s3579_s11, %s3579_s11 }
 0x8c9   :  { %p3586_p3 = por %p3585_p2, %p3584_p1 }
 0x8cb   :  { %p3587_p4 = pnand %p3586_p3, %p3580_p0 }
 0x92d   :  { %v2245_v1 = vpop.permute.xlu0 %2244 }
 0x92e   :  { %2247 = vst.msk [vmem:[#allocation15] sm:$0x3] %vm414_vm5, %v2245_v1 }
 0x92f   :  { %3590 = shalt.err (!%p3587_p4)
}
 0x930   :  { %s3591_s8 = scalar_lea.hbm %s4305_s9, 256 }
 0x931   :  { %p3592_p5 = scmp.ne.s32.totalorder %s4305_s9, %s3591_s8  ;;  %p3595_p6 = scmp.lt.u32.totalorder %s3591_s8, %s4305_s9 }
 0x933   :  { %p3597_p7 = pnand %p3595_p6, %p3592_p5 }
 0x935   :  { %3600 = shalt.err (!%p3597_p7)
}
 0x936   :  { %2281 = dma.vmem_to_hbm [thread:$0]  %s2276_s1, 256, %s4305_s9, [#allocation16], %s3637_s25, %s3637_s25, %s3638_s26  }
 0x937   :  { %s3601_s4 = scalar_lea.vmem %s2289_s29, 32  ;;  %p3606_p9 = scmp.lt.s32.totalorder %s2289_s29, %s2289_s29 }
 0x938   :  { %p3602_p8 = scmp.ne.s32.totalorder %s2289_s29, %s3601_s4  ;;  %p3607_p10 = scmp.lt.s32.totalorder %s3601_s4, %s3601_s4 }
 0x93a   :  { %p3608_p11 = por %p3607_p10, %p3606_p9 }
 0x93c   :  { %p3609_p12 = pnand %p3608_p11, %p3602_p8 }
 0x93e   :  { %3612 = shalt.err (!%p3609_p12)
}
 0x93f   :  { %s3613_s15 = scalar_lea.hbm %s4306_s10, 32 }
 0x940   :  { %p3614_p13 = scmp.ne.s32.totalorder %s4306_s10, %s3613_s15  ;;  %p3617_p0 = scmp.lt.u32.totalorder %s3613_s15, %s4306_s10 }
 0x942   :  { %p3619_p1 = pnand %p3617_p0, %p3614_p13 }
 0x944   :  { %3622 = shalt.err (!%p3619_p1)
}
 0x945   :  { %2291 = dma.vmem_to_hbm [thread:$0]  %s2289_s29, 32, %s4306_s10, [#allocation16]  }
 0x946   :  { %3631 = dma.done.wait [#allocation5], 256  }
 0x947   :  { %3632 = vsyncadd [#allocation5], 4294967040 }
 0x948   :  { %3633 = dma.done.wait [#allocation16], 288  }
 0x949   :  { %3634 = vsyncadd [#allocation16], 4294967008 }
 0x94a   :  { %2301 = vsyncpa [#allocation4], 1 }
 0x94b   :  { %2302 = vsyncpa [#allocation7], 1 }
 0x94c   :  { %2303 = vsyncpa [#allocation10], 1 }
 0x94d   :  { %2304 = vsyncpa [#allocation13], 1 }
 0x94e   :  { %2305 = vsyncpa [#allocation5], 1 }
 0x94f   :  { %2306 = vsyncpa [#allocation16], 1 }

</bundles_post_ra>
